<compile_context>
chip_gen: v7x
topology: tpu7x:2x2x1
jax: 0.10.0
libtpu: 0.0.40
codegen_flags: <defaults>
</compile_context>

<pallas_src>
import functools
import math

import jax
import jax.numpy as jnp
from jax import lax
from jax.experimental import pallas as pl
from jax.experimental.pallas import tpu as pltpu

# ----------------------------- config (small, synthetic) -----------------------------
B, S, H = 2, 16, 64          # batch, seq, hidden_size
NH, D = 4, 16                # num_attention_heads, head_dim (H = NH * D)
INTER = 4 * H                # intermediate_size
EPS = 1e-5                   # layer_norm_eps
ROPE_BASE = 10000.0          # rotary base (rotary_pct = 1.0 -> full head dim)


# ----------------------------- in-kernel helpers -----------------------------
def _erf(x):
    # Abramowitz & Stegun 7.1.26 polynomial (max abs err 1.5e-7) — only exp/mul/add/where,
    # so it always lowers on Mosaic.
    a1, a2, a3, a4, a5 = 0.254829592, -0.284496736, 1.421413741, -1.453152027, 1.061405429
    p = 0.3275911
    ax = jnp.abs(x)
    t = 1.0 / (1.0 + p * ax)
    poly = ((((a5 * t + a4) * t + a3) * t + a2) * t + a1) * t
    y = 1.0 - poly * jnp.exp(-ax * ax)
    return jnp.where(x >= 0.0, y, -y)


def _gelu_exact(x):
    return 0.5 * x * (1.0 + _erf(x * (1.0 / math.sqrt(2.0))))


# ----------------------------- fused layer kernel -----------------------------
def _make_kernel(*, seq, n_heads, head_dim, inter, eps, output_attentions):
    hd = n_heads * head_dim
    half = head_dim // 2
    q_off = inter
    k_off = inter + hd
    v_off = inter + 2 * hd

    def kernel(x_ref, g_ref, bln_ref, wcat_ref, bcat_ref, wo_ref, bo_ref,
               wproj_ref, bproj_ref, cos_ref, sina_ref, sinb_ref,
               out_ref, *rest):
        if output_attentions:
            aw_ref, ctx_sc = rest
        else:
            (ctx_sc,) = rest

        x = x_ref[0]                                   # (S, H) f32

        # ---- LayerNorm (f32) ----
        mean = jnp.mean(x, axis=-1, keepdims=True)
        xc = x - mean
        var = jnp.mean(xc * xc, axis=-1, keepdims=True)
        ln = xc * lax.rsqrt(var + eps) * g_ref[...] + bln_ref[...]

        # ---- merged [FC | Q | K | V] matmul: one MXU pass, bf16 operands, f32 accum ----
        z = jnp.dot(ln.astype(jnp.bfloat16), wcat_ref[...],
                    preferred_element_type=jnp.float32) + bcat_ref[...]

        # ---- RoPE, vectorized over all heads at once on the (S, NH*D) Q / K slabs ----
        # rot-within-head is expressed as two global lane shifts of the slab; the masked
        # sin tables (zeros on the cross-head-leaked lanes) make it exact.
        cos_t = cos_ref[...]
        sin_a = sina_ref[...]
        sin_b = sinb_ref[...]

        def rope(t):                                   # t: (S, NH*D) f32
            left = jnp.concatenate([t[:, half:], t[:, :half]], axis=1)          # t[(j+half) mod]
            right = jnp.concatenate([t[:, hd - half:], t[:, :hd - half]], axis=1)  # t[(j-half) mod]
            return t * cos_t + left * sin_a + right * sin_b

        q = rope(z[:, q_off:q_off + hd]).astype(jnp.bfloat16)   # 1/sqrt(D) already folded into Wq
        k = rope(z[:, k_off:k_off + hd]).astype(jnp.bfloat16)
        v = z[:, v_off:v_off + hd].astype(jnp.bfloat16)

        rows = lax.broadcasted_iota(jnp.int32, (seq, seq), 0)
        cols = lax.broadcasted_iota(jnp.int32, (seq, seq), 1)
        causal = cols <= rows

        # ---- per-head attention, context written into a lane-dense VMEM scratch slab ----
        for h in range(n_heads):
            sl = slice(h * head_dim, (h + 1) * head_dim)
            s = lax.dot_general(q[:, sl], k[:, sl], (((1,), (1,)), ((), ())),
                                preferred_element_type=jnp.float32)
            s = jnp.where(causal, s, -1e30)
            m = jnp.max(s, axis=-1, keepdims=True)
            p = jnp.exp(s - m)
            inv = pl.reciprocal(jnp.sum(p, axis=-1, keepdims=True), approx=True)
            w = p * inv
            if output_attentions:
                aw_ref[0, h] = w
            ctx_sc[:, sl] = jnp.dot(w.astype(jnp.bfloat16), v[:, sl],
                                    preferred_element_type=jnp.float32)

        attn_out = jnp.dot(ctx_sc[...].astype(jnp.bfloat16), wo_ref[...],
                           preferred_element_type=jnp.float32) + bo_ref[...]

        # ---- MLP on the same ln + parallel residual (dropouts identity in eval) ----
        fc = z[:, :inter]                               # lane-aligned slice (offset 0)
        gact = _gelu_exact(fc)
        mlp = jnp.dot(gact.astype(jnp.bfloat16), wproj_ref[...],
                      preferred_element_type=jnp.float32) + bproj_ref[...]

        out_ref[0] = mlp + attn_out + x

    return kernel


# ----------------------------- host-side weight / table prep (done once) -----------------------------
def rope_tables(seq, head_dim):
    # (S, D) tables for the pure-JAX reference.
    inv_freq = 1.0 / (ROPE_BASE ** (jnp.arange(0, head_dim, 2, dtype=jnp.float32) / head_dim))
    pos = jnp.arange(seq, dtype=jnp.float32)
    freqs = pos[:, None] * inv_freq[None, :]
    emb = jnp.concatenate([freqs, freqs], axis=-1)
    return jnp.cos(emb), jnp.sin(emb)


def prepare_params(params, seq):
    """Regroup QKV columns, fold 1/sqrt(D) into Q, merge [FC|Q|K|V], cast weights to bf16,
    and precompute the slab-layout RoPE tables. Call once; NOT in the per-forward path."""
    hd = NH * D
    half = D // 2
    scale = 1.0 / math.sqrt(D)

    w_qkv = params["w_qkv"].reshape(H, NH, 3, D)
    b_qkv = params["b_qkv"].reshape(NH, 3, D)
    wq = (w_qkv[:, :, 0, :] * scale).reshape(H, hd)
    wk = w_qkv[:, :, 1, :].reshape(H, hd)
    wv = w_qkv[:, :, 2, :].reshape(H, hd)
    bq = (b_qkv[:, 0, :] * scale).reshape(hd)
    bk = b_qkv[:, 1, :].reshape(hd)
    bv = b_qkv[:, 2, :].reshape(hd)

    w_cat = jnp.concatenate([params["w_fc"], wq, wk, wv], axis=1).astype(jnp.bfloat16)
    b_cat = jnp.concatenate([params["b_fc"], bq, bk, bv]).reshape(1, -1).astype(jnp.float32)

    # RoPE tables laid out over the (S, NH*D) slab: cos tiled per half-block; sin split into
    # a "-sin on first halves / 0 elsewhere" and a "+sin on second halves / 0 elsewhere" table.
    inv_freq = 1.0 / (ROPE_BASE ** (jnp.arange(0, D, 2, dtype=jnp.float32) / D))
    pos = jnp.arange(seq, dtype=jnp.float32)
    freqs = pos[:, None] * inv_freq[None, :]                     # (S, D/2)
    cos_h, sin_h = jnp.cos(freqs), jnp.sin(freqs)
    zeros = jnp.zeros_like(sin_h)
    cos_t = jnp.tile(cos_h, (1, 2 * NH))                         # (S, NH*D)
    sin_a = jnp.tile(jnp.concatenate([-sin_h, zeros], axis=1), (1, NH))
    sin_b = jnp.tile(jnp.concatenate([zeros, sin_h], axis=1), (1, NH))

    return {
        "ln_g": params["ln_g"].reshape(1, H).astype(jnp.float32),
        "ln_b": params["ln_b"].reshape(1, H).astype(jnp.float32),
        "w_cat": w_cat, "b_cat": b_cat,
        "w_o": params["w_o"].astype(jnp.bfloat16),
        "b_o": params["b_o"].reshape(1, H).astype(jnp.float32),
        "w_proj": params["w_proj"].astype(jnp.bfloat16),
        "b_proj": params["b_proj"].reshape(1, H).astype(jnp.float32),
        "cos_t": cos_t, "sin_a": sin_a, "sin_b": sin_b,
    }


# ----------------------------- wrapper -----------------------------
def gpt_neox_layer_forward(prep, hidden_states, output_attentions=False):
    Bh, Sh, Hh = hidden_states.shape
    hd = NH * D
    ncat = INTER + 3 * hd

    kernel = _make_kernel(seq=Sh, n_heads=NH, head_dim=D, inter=INTER, eps=EPS,
                          output_attentions=output_attentions)

    out_shape = jax.ShapeDtypeStruct((Bh, Sh, Hh), jnp.float32)
    out_spec = pl.BlockSpec((1, Sh, Hh), lambda b: (b, 0, 0))
    if output_attentions:
        out_shapes = (out_shape, jax.ShapeDtypeStruct((Bh, NH, Sh, Sh), jnp.float32))
        out_specs = (out_spec, pl.BlockSpec((1, NH, Sh, Sh), lambda b: (b, 0, 0, 0)))
    else:
        out_shapes = out_shape
        out_specs = out_spec

    result = pl.pallas_call(
        kernel,
        out_shape=out_shapes,
        grid=(Bh,),
        in_specs=[
            pl.BlockSpec((1, Sh, Hh), lambda b: (b, 0, 0)),    # hidden_states
            pl.BlockSpec((1, Hh), lambda b: (0, 0)),           # ln gamma
            pl.BlockSpec((1, Hh), lambda b: (0, 0)),           # ln beta
            pl.BlockSpec((Hh, ncat), lambda b: (0, 0)),        # [w_fc | w_q | w_k | w_v] (bf16)
            pl.BlockSpec((1, ncat), lambda b: (0, 0)),         # merged bias (f32)
            pl.BlockSpec((Hh, Hh), lambda b: (0, 0)),          # w_o (bf16)
            pl.BlockSpec((1, Hh), lambda b: (0, 0)),           # b_o
            pl.BlockSpec((INTER, Hh), lambda b: (0, 0)),       # w_proj (bf16)
            pl.BlockSpec((1, Hh), lambda b: (0, 0)),           # b_proj
            pl.BlockSpec((Sh, hd), lambda b: (0, 0)),          # cos table (slab layout)
            pl.BlockSpec((Sh, hd), lambda b: (0, 0)),          # -sin (first halves)
            pl.BlockSpec((Sh, hd), lambda b: (0, 0)),          # +sin (second halves)
        ],
        out_specs=out_specs,
        scratch_shapes=[pltpu.VMEM((Sh, hd), jnp.float32)],    # ctx slab stays in VMEM
        compiler_params=pltpu.CompilerParams(
            dimension_semantics=("parallel",),
            vmem_limit_bytes=32 * 1024 * 1024),
    )(hidden_states,
      prep["ln_g"], prep["ln_b"], prep["w_cat"], prep["b_cat"],
      prep["w_o"], prep["b_o"], prep["w_proj"], prep["b_proj"],
      prep["cos_t"], prep["sin_a"], prep["sin_b"])

    if output_attentions:
        out, attn_w = result
        return out, attn_w
    return result, None


# ----------------------------- pure-JAX reference for verification -----------------------------
def reference_forward(params, hidden_states):
    x = hidden_states
    mean = jnp.mean(x, axis=-1, keepdims=True)
    var = jnp.mean((x - mean) ** 2, axis=-1, keepdims=True)
    ln = (x - mean) / jnp.sqrt(var + EPS) * params["ln_g"] + params["ln_b"]

    qkv = ln @ params["w_qkv"] + params["b_qkv"]
    qkv = qkv.reshape(B, S, NH, 3 * D)
    q = qkv[..., :D].transpose(0, 2, 1, 3)
    k = qkv[..., D:2 * D].transpose(0, 2, 1, 3)
    v = qkv[..., 2 * D:].transpose(0, 2, 1, 3)

    cos, sin = rope_tables(S, D)

    def rope(t):
        rot = jnp.concatenate([-t[..., D // 2:], t[..., :D // 2]], axis=-1)
        return t * cos + rot * sin

    q, k = rope(q), rope(k)
    scores = jnp.einsum("bhqd,bhkd->bhqk", q, k) / (D ** 0.5)
    rows = jnp.arange(S)[:, None]
    cols = jnp.arange(S)[None, :]
    scores = jnp.where(cols <= rows, scores, -1e30)
    w = jax.nn.softmax(scores, axis=-1)
    ctx = jnp.einsum("bhqk,bhkd->bhqd", w, v)
    ctx = ctx.transpose(0, 2, 1, 3).reshape(B, S, H)
    attn_out = ctx @ params["w_o"] + params["b_o"]

    h = jax.nn.gelu(ln @ params["w_fc"] + params["b_fc"], approximate=False)
    mlp = h @ params["w_proj"] + params["b_proj"]
    return mlp + attn_out + x, w


# ----------------------------- params & main -----------------------------
def init_params(key):
    ks = jax.random.split(key, 8)
    s = 0.02
    return {
        "ln_g": 1.0 + s * jax.random.normal(ks[0], (H,), jnp.float32),
        "ln_b": s * jax.random.normal(ks[1], (H,), jnp.float32),
        "w_qkv": s * jax.random.normal(ks[2], (H, NH * 3 * D), jnp.float32),
        "b_qkv": s * jax.random.normal(ks[3], (NH * 3 * D,), jnp.float32),
        "w_o": s * jax.random.normal(ks[4], (H, H), jnp.float32),
        "b_o": s * jax.random.normal(ks[5], (H,), jnp.float32),
        "w_fc": s * jax.random.normal(ks[6], (H, INTER), jnp.float32),
        "b_fc": jnp.zeros((INTER,), jnp.float32),
        "w_proj": s * jax.random.normal(ks[7], (INTER, H), jnp.float32),
        "b_proj": jnp.zeros((H,), jnp.float32),
    }


if __name__ == "__main__":
    key = jax.random.PRNGKey(0)
    pkey, xkey = jax.random.split(key)
    params = init_params(pkey)
    hidden_states = jax.random.normal(xkey, (B, S, H), jnp.float32)

    prep = prepare_params(params, S)   # one-time weight regroup/merge/bf16 + RoPE tables

    fwd = jax.jit(gpt_neox_layer_forward, static_argnames=("output_attentions",))

    # Default path: no attention-weights output (no O(S^2) HBM writeback).
    out, _ = fwd(prep, hidden_states)
    out = jax.block_until_ready(out)

    # Optional path: output_attentions=True (matches HF semantics when requested).
    out_aw, attn_w = fwd(prep, hidden_states, output_attentions=True)
    out_aw = jax.block_until_ready(out_aw)
    attn_w = jax.block_until_ready(attn_w)

    ref_out, ref_w = reference_forward(params, hidden_states)
    assert out.shape == (B, S, H)
    assert attn_w.shape == (B, NH, S, S)
    # bf16 MXU operands + approx reciprocal -> slightly looser tolerance than the f32 version.
    assert jnp.allclose(out, ref_out, atol=1e-2, rtol=1e-2), "hidden_states mismatch"
    assert jnp.allclose(out_aw, ref_out, atol=1e-2, rtol=1e-2), "hidden_states (attn path) mismatch"
    assert jnp.allclose(attn_w, ref_w, atol=1e-2, rtol=1e-2), "attn_weights mismatch"
    print("KERNEL_OK")
</pallas_src>

<mosaic_0001>
module attributes {stable_mosaic.version = 11 : i64} {
  func.func @kernel(%arg0: i32, %arg1: memref<1x16x64xf32, #tpu.memory_space<vmem>>, %arg2: memref<1x64xf32, #tpu.memory_space<vmem>>, %arg3: memref<1x64xf32, #tpu.memory_space<vmem>>, %arg4: memref<64x448xbf16, #tpu.memory_space<vmem>>, %arg5: memref<1x448xf32, #tpu.memory_space<vmem>>, %arg6: memref<64x64xbf16, #tpu.memory_space<vmem>>, %arg7: memref<1x64xf32, #tpu.memory_space<vmem>>, %arg8: memref<256x64xbf16, #tpu.memory_space<vmem>>, %arg9: memref<1x64xf32, #tpu.memory_space<vmem>>, %arg10: memref<16x64xf32, #tpu.memory_space<vmem>>, %arg11: memref<16x64xf32, #tpu.memory_space<vmem>>, %arg12: memref<16x64xf32, #tpu.memory_space<vmem>>, %arg13: memref<1x16x64xf32, #tpu.memory_space<vmem>>, %arg14: memref<16x64xf32, #tpu.memory_space<vmem>>) attributes {dimension_semantics = [#tpu.dimension_semantics<parallel>], iteration_bounds = array<i64: 2>, scalar_prefetch = 0 : i64, scratch_operands = 1 : i64, tpu.core_type = #tpu.core_type<tc>, window_params = [{transform_indices = @transform_0, window_bounds = array<i64: 1, 16, 64>}, {pipeline_mode = #tpu.pipeline_mode<synchronous>, transform_indices = @transform_1, window_bounds = array<i64: 1, 64>}, {pipeline_mode = #tpu.pipeline_mode<synchronous>, transform_indices = @transform_2, window_bounds = array<i64: 1, 64>}, {pipeline_mode = #tpu.pipeline_mode<synchronous>, transform_indices = @transform_3, window_bounds = array<i64: 64, 448>}, {pipeline_mode = #tpu.pipeline_mode<synchronous>, transform_indices = @transform_4, window_bounds = array<i64: 1, 448>}, {pipeline_mode = #tpu.pipeline_mode<synchronous>, transform_indices = @transform_5, window_bounds = array<i64: 64, 64>}, {pipeline_mode = #tpu.pipeline_mode<synchronous>, transform_indices = @transform_6, window_bounds = array<i64: 1, 64>}, {pipeline_mode = #tpu.pipeline_mode<synchronous>, transform_indices = @transform_7, window_bounds = array<i64: 256, 64>}, {pipeline_mode = #tpu.pipeline_mode<synchronous>, transform_indices = @transform_8, window_bounds = array<i64: 1, 64>}, {pipeline_mode = #tpu.pipeline_mode<synchronous>, transform_indices = @transform_9, window_bounds = array<i64: 16, 64>}, {pipeline_mode = #tpu.pipeline_mode<synchronous>, transform_indices = @transform_10, window_bounds = array<i64: 16, 64>}, {pipeline_mode = #tpu.pipeline_mode<synchronous>, transform_indices = @transform_11, window_bounds = array<i64: 16, 64>}, {transform_indices = @transform_12, window_bounds = array<i64: 1, 16, 64>}]} {
    %c0 = arith.constant 0 : index
    %c0_0 = arith.constant 0 : index
    %c0_1 = arith.constant 0 : index
    %0 = vector.load %arg1[%c0, %c0_0, %c0_1] : memref<1x16x64xf32, #tpu.memory_space<vmem>>, vector<1x16x64xf32>
    %1 = vector.shape_cast %0 : vector<1x16x64xf32> to vector<16x64xf32>
    %cst = arith.constant dense<0.000000e+00> : vector<16xf32>
    %2 = vector.multi_reduction <add>, %1, %cst [1] : vector<16x64xf32> to vector<16xf32>
    %3 = vector.shape_cast %2 : vector<16xf32> to vector<16x1xf32>
    %cst_2 = arith.constant 6.400000e+01 : f32
    %4 = vector.broadcast %cst_2 : f32 to vector<16x1xf32>
    %5 = arith.divf %3, %4 : vector<16x1xf32>
    %6 = vector.broadcast %5 : vector<16x1xf32> to vector<16x64xf32>
    %7 = arith.subf %1, %6 : vector<16x64xf32>
    %8 = arith.mulf %7, %7 : vector<16x64xf32>
    %cst_3 = arith.constant dense<0.000000e+00> : vector<16xf32>
    %9 = vector.multi_reduction <add>, %8, %cst_3 [1] : vector<16x64xf32> to vector<16xf32>
    %10 = vector.shape_cast %9 : vector<16xf32> to vector<16x1xf32>
    %cst_4 = arith.constant 6.400000e+01 : f32
    %11 = vector.broadcast %cst_4 : f32 to vector<16x1xf32>
    %12 = arith.divf %10, %11 : vector<16x1xf32>
    %cst_5 = arith.constant 9.99999974E-6 : f32
    %13 = vector.broadcast %cst_5 : f32 to vector<16x1xf32>
    %14 = arith.addf %12, %13 : vector<16x1xf32>
    %15 = math.rsqrt %14 : vector<16x1xf32>
    %16 = vector.broadcast %15 : vector<16x1xf32> to vector<16x64xf32>
    %17 = arith.mulf %7, %16 : vector<16x64xf32>
    %c0_6 = arith.constant 0 : index
    %c0_7 = arith.constant 0 : index
    %18 = vector.load %arg2[%c0_6, %c0_7] : memref<1x64xf32, #tpu.memory_space<vmem>>, vector<1x64xf32>
    %19 = vector.broadcast %18 : vector<1x64xf32> to vector<16x64xf32>
    %20 = arith.mulf %17, %19 : vector<16x64xf32>
    %c0_8 = arith.constant 0 : index
    %c0_9 = arith.constant 0 : index
    %21 = vector.load %arg3[%c0_8, %c0_9] : memref<1x64xf32, #tpu.memory_space<vmem>>, vector<1x64xf32>
    %22 = vector.broadcast %21 : vector<1x64xf32> to vector<16x64xf32>
    %23 = arith.addf %20, %22 : vector<16x64xf32>
    %24 = arith.truncf %23 : vector<16x64xf32> to vector<16x64xbf16>
    %c0_10 = arith.constant 0 : index
    %c0_11 = arith.constant 0 : index
    %25 = vector.load %arg4[%c0_10, %c0_11] : memref<64x448xbf16, #tpu.memory_space<vmem>>, vector<64x448xbf16>
    %cst_12 = arith.constant dense<0.000000e+00> : vector<16x448xf32>
    %26 = tpu.matmul %24, %25, %cst_12 {dimension_numbers = #tpu.dot_dimension_numbers<[1], [0], [0], [1], [0, 0, 1, 1], [], []>} : vector<16x64xbf16>, vector<64x448xbf16>, vector<16x448xf32> -> vector<16x448xf32>
    %c0_13 = arith.constant 0 : index
    %c0_14 = arith.constant 0 : index
    %27 = vector.load %arg5[%c0_13, %c0_14] : memref<1x448xf32, #tpu.memory_space<vmem>>, vector<1x448xf32>
    %28 = vector.broadcast %27 : vector<1x448xf32> to vector<16x448xf32>
    %29 = arith.addf %26, %28 : vector<16x448xf32>
    %c0_15 = arith.constant 0 : index
    %c0_16 = arith.constant 0 : index
    %30 = vector.load %arg10[%c0_15, %c0_16] : memref<16x64xf32, #tpu.memory_space<vmem>>, vector<16x64xf32>
    %c0_17 = arith.constant 0 : index
    %c0_18 = arith.constant 0 : index
    %31 = vector.load %arg11[%c0_17, %c0_18] : memref<16x64xf32, #tpu.memory_space<vmem>>, vector<16x64xf32>
    %c0_19 = arith.constant 0 : index
    %c0_20 = arith.constant 0 : index
    %32 = vector.load %arg12[%c0_19, %c0_20] : memref<16x64xf32, #tpu.memory_space<vmem>>, vector<16x64xf32>
    %33 = vector.extract_strided_slice %29 {offsets = [0, 256], sizes = [16, 64], strides = [1, 1]} : vector<16x448xf32> to vector<16x64xf32>
    %34 = vector.extract_strided_slice %33 {offsets = [0, 8], sizes = [16, 56], strides = [1, 1]} : vector<16x64xf32> to vector<16x56xf32>
    %35 = vector.extract_strided_slice %33 {offsets = [0, 0], sizes = [16, 8], strides = [1, 1]} : vector<16x64xf32> to vector<16x8xf32>
    %36 = tpu.concatenate %34, %35 in 1 : vector<16x56xf32>, vector<16x8xf32> -> vector<16x64xf32>
    %37 = vector.extract_strided_slice %33 {offsets = [0, 56], sizes = [16, 8], strides = [1, 1]} : vector<16x64xf32> to vector<16x8xf32>
    %38 = vector.extract_strided_slice %33 {offsets = [0, 0], sizes = [16, 56], strides = [1, 1]} : vector<16x64xf32> to vector<16x56xf32>
    %39 = tpu.concatenate %37, %38 in 1 : vector<16x8xf32>, vector<16x56xf32> -> vector<16x64xf32>
    %40 = arith.mulf %33, %30 : vector<16x64xf32>
    %41 = arith.mulf %36, %31 : vector<16x64xf32>
    %42 = arith.addf %40, %41 : vector<16x64xf32>
    %43 = arith.mulf %39, %32 : vector<16x64xf32>
    %44 = arith.addf %42, %43 : vector<16x64xf32>
    %45 = arith.truncf %44 : vector<16x64xf32> to vector<16x64xbf16>
    %46 = vector.extract_strided_slice %29 {offsets = [0, 320], sizes = [16, 64], strides = [1, 1]} : vector<16x448xf32> to vector<16x64xf32>
    %47 = vector.extract_strided_slice %46 {offsets = [0, 8], sizes = [16, 56], strides = [1, 1]} : vector<16x64xf32> to vector<16x56xf32>
    %48 = vector.extract_strided_slice %46 {offsets = [0, 0], sizes = [16, 8], strides = [1, 1]} : vector<16x64xf32> to vector<16x8xf32>
    %49 = tpu.concatenate %47, %48 in 1 : vector<16x56xf32>, vector<16x8xf32> -> vector<16x64xf32>
    %50 = vector.extract_strided_slice %46 {offsets = [0, 56], sizes = [16, 8], strides = [1, 1]} : vector<16x64xf32> to vector<16x8xf32>
    %51 = vector.extract_strided_slice %46 {offsets = [0, 0], sizes = [16, 56], strides = [1, 1]} : vector<16x64xf32> to vector<16x56xf32>
    %52 = tpu.concatenate %50, %51 in 1 : vector<16x8xf32>, vector<16x56xf32> -> vector<16x64xf32>
    %53 = arith.mulf %46, %30 : vector<16x64xf32>
    %54 = arith.mulf %49, %31 : vector<16x64xf32>
    %55 = arith.addf %53, %54 : vector<16x64xf32>
    %56 = arith.mulf %52, %32 : vector<16x64xf32>
    %57 = arith.addf %55, %56 : vector<16x64xf32>
    %58 = arith.truncf %57 : vector<16x64xf32> to vector<16x64xbf16>
    %59 = vector.extract_strided_slice %29 {offsets = [0, 384], sizes = [16, 64], strides = [1, 1]} : vector<16x448xf32> to vector<16x64xf32>
    %60 = arith.truncf %59 : vector<16x64xf32> to vector<16x64xbf16>
    %61 = tpu.iota {dimensions = array<i32: 0>} : vector<16x16xi32>
    %62 = tpu.iota {dimensions = array<i32: 1>} : vector<16x16xi32>
    %63 = arith.cmpi sle, %62, %61 : vector<16x16xi32>
    %64 = vector.extract_strided_slice %45 {offsets = [0, 0], sizes = [16, 16], strides = [1, 1]} : vector<16x64xbf16> to vector<16x16xbf16>
    %65 = vector.extract_strided_slice %58 {offsets = [0, 0], sizes = [16, 16], strides = [1, 1]} : vector<16x64xbf16> to vector<16x16xbf16>
    %cst_21 = arith.constant dense<0.000000e+00> : vector<16x16xf32>
    %66 = tpu.matmul %64, %65, %cst_21 {dimension_numbers = #tpu.dot_dimension_numbers<[1], [1], [0], [0], [0, 0, 1, 0], [], []>} : vector<16x16xbf16>, vector<16x16xbf16>, vector<16x16xf32> -> vector<16x16xf32>
    %cst_22 = arith.constant -1.000000e+30 : f32
    %67 = vector.broadcast %cst_22 : f32 to vector<16x16xf32>
    %68 = arith.select %63, %66, %67 : vector<16x16xi1>, vector<16x16xf32>
    %cst_23 = arith.constant dense<0xFF800000> : vector<16xf32>
    %69 = vector.multi_reduction <maximumf>, %68, %cst_23 [1] : vector<16x16xf32> to vector<16xf32>
    %70 = vector.shape_cast %69 : vector<16xf32> to vector<16x1xf32>
    %71 = vector.broadcast %70 : vector<16x1xf32> to vector<16x16xf32>
    %72 = arith.subf %68, %71 : vector<16x16xf32>
    %73 = math.exp %72 : vector<16x16xf32>
    %cst_24 = arith.constant dense<0.000000e+00> : vector<16xf32>
    %74 = vector.multi_reduction <add>, %73, %cst_24 [1] : vector<16x16xf32> to vector<16xf32>
    %75 = vector.shape_cast %74 : vector<16xf32> to vector<16x1xf32>
    %76 = tpu.reciprocal %75 {approx = true} : vector<16x1xf32> -> vector<16x1xf32>
    %77 = vector.broadcast %76 : vector<16x1xf32> to vector<16x16xf32>
    %78 = arith.mulf %73, %77 : vector<16x16xf32>
    %79 = arith.truncf %78 : vector<16x16xf32> to vector<16x16xbf16>
    %80 = vector.extract_strided_slice %60 {offsets = [0, 0], sizes = [16, 16], strides = [1, 1]} : vector<16x64xbf16> to vector<16x16xbf16>
    %cst_25 = arith.constant dense<0.000000e+00> : vector<16x16xf32>
    %81 = tpu.matmul %79, %80, %cst_25 {dimension_numbers = #tpu.dot_dimension_numbers<[1], [0], [0], [1], [0, 0, 1, 1], [], []>} : vector<16x16xbf16>, vector<16x16xbf16>, vector<16x16xf32> -> vector<16x16xf32>
    %c0_26 = arith.constant 0 : index
    %c0_27 = arith.constant 0 : index
    %82 = vector.load %arg14[%c0_26, %c0_27] : memref<16x64xf32, #tpu.memory_space<vmem>>, vector<16x16xf32>
    tpu.vector_store %arg14[%c0_26, %c0_27], %81 {strides = array<i32>} : memref<16x64xf32, #tpu.memory_space<vmem>>, vector<16x16xf32>,
    %83 = vector.extract_strided_slice %45 {offsets = [0, 16], sizes = [16, 16], strides = [1, 1]} : vector<16x64xbf16> to vector<16x16xbf16>
    %84 = vector.extract_strided_slice %58 {offsets = [0, 16], sizes = [16, 16], strides = [1, 1]} : vector<16x64xbf16> to vector<16x16xbf16>
    %cst_28 = arith.constant dense<0.000000e+00> : vector<16x16xf32>
    %85 = tpu.matmul %83, %84, %cst_28 {dimension_numbers = #tpu.dot_dimension_numbers<[1], [1], [0], [0], [0, 0, 1, 0], [], []>} : vector<16x16xbf16>, vector<16x16xbf16>, vector<16x16xf32> -> vector<16x16xf32>
    %cst_29 = arith.constant -1.000000e+30 : f32
    %86 = vector.broadcast %cst_29 : f32 to vector<16x16xf32>
    %87 = arith.select %63, %85, %86 : vector<16x16xi1>, vector<16x16xf32>
    %cst_30 = arith.constant dense<0xFF800000> : vector<16xf32>
    %88 = vector.multi_reduction <maximumf>, %87, %cst_30 [1] : vector<16x16xf32> to vector<16xf32>
    %89 = vector.shape_cast %88 : vector<16xf32> to vector<16x1xf32>
    %90 = vector.broadcast %89 : vector<16x1xf32> to vector<16x16xf32>
    %91 = arith.subf %87, %90 : vector<16x16xf32>
    %92 = math.exp %91 : vector<16x16xf32>
    %cst_31 = arith.constant dense<0.000000e+00> : vector<16xf32>
    %93 = vector.multi_reduction <add>, %92, %cst_31 [1] : vector<16x16xf32> to vector<16xf32>
    %94 = vector.shape_cast %93 : vector<16xf32> to vector<16x1xf32>
    %95 = tpu.reciprocal %94 {approx = true} : vector<16x1xf32> -> vector<16x1xf32>
    %96 = vector.broadcast %95 : vector<16x1xf32> to vector<16x16xf32>
    %97 = arith.mulf %92, %96 : vector<16x16xf32>
    %98 = arith.truncf %97 : vector<16x16xf32> to vector<16x16xbf16>
    %99 = vector.extract_strided_slice %60 {offsets = [0, 16], sizes = [16, 16], strides = [1, 1]} : vector<16x64xbf16> to vector<16x16xbf16>
    %cst_32 = arith.constant dense<0.000000e+00> : vector<16x16xf32>
    %100 = tpu.matmul %98, %99, %cst_32 {dimension_numbers = #tpu.dot_dimension_numbers<[1], [0], [0], [1], [0, 0, 1, 1], [], []>} : vector<16x16xbf16>, vector<16x16xbf16>, vector<16x16xf32> -> vector<16x16xf32>
    %c0_33 = arith.constant 0 : index
    %c16 = arith.constant 16 : index
    %101 = vector.load %arg14[%c0_33, %c16] : memref<16x64xf32, #tpu.memory_space<vmem>>, vector<16x16xf32>
    tpu.vector_store %arg14[%c0_33, %c16], %100 {strides = array<i32>} : memref<16x64xf32, #tpu.memory_space<vmem>>, vector<16x16xf32>,
    %102 = vector.extract_strided_slice %45 {offsets = [0, 32], sizes = [16, 16], strides = [1, 1]} : vector<16x64xbf16> to vector<16x16xbf16>
    %103 = vector.extract_strided_slice %58 {offsets = [0, 32], sizes = [16, 16], strides = [1, 1]} : vector<16x64xbf16> to vector<16x16xbf16>
    %cst_34 = arith.constant dense<0.000000e+00> : vector<16x16xf32>
    %104 = tpu.matmul %102, %103, %cst_34 {dimension_numbers = #tpu.dot_dimension_numbers<[1], [1], [0], [0], [0, 0, 1, 0], [], []>} : vector<16x16xbf16>, vector<16x16xbf16>, vector<16x16xf32> -> vector<16x16xf32>
    %cst_35 = arith.constant -1.000000e+30 : f32
    %105 = vector.broadcast %cst_35 : f32 to vector<16x16xf32>
    %106 = arith.select %63, %104, %105 : vector<16x16xi1>, vector<16x16xf32>
    %cst_36 = arith.constant dense<0xFF800000> : vector<16xf32>
    %107 = vector.multi_reduction <maximumf>, %106, %cst_36 [1] : vector<16x16xf32> to vector<16xf32>
    %108 = vector.shape_cast %107 : vector<16xf32> to vector<16x1xf32>
    %109 = vector.broadcast %108 : vector<16x1xf32> to vector<16x16xf32>
    %110 = arith.subf %106, %109 : vector<16x16xf32>
    %111 = math.exp %110 : vector<16x16xf32>
    %cst_37 = arith.constant dense<0.000000e+00> : vector<16xf32>
    %112 = vector.multi_reduction <add>, %111, %cst_37 [1] : vector<16x16xf32> to vector<16xf32>
    %113 = vector.shape_cast %112 : vector<16xf32> to vector<16x1xf32>
    %114 = tpu.reciprocal %113 {approx = true} : vector<16x1xf32> -> vector<16x1xf32>
    %115 = vector.broadcast %114 : vector<16x1xf32> to vector<16x16xf32>
    %116 = arith.mulf %111, %115 : vector<16x16xf32>
    %117 = arith.truncf %116 : vector<16x16xf32> to vector<16x16xbf16>
    %118 = vector.extract_strided_slice %60 {offsets = [0, 32], sizes = [16, 16], strides = [1, 1]} : vector<16x64xbf16> to vector<16x16xbf16>
    %cst_38 = arith.constant dense<0.000000e+00> : vector<16x16xf32>
    %119 = tpu.matmul %117, %118, %cst_38 {dimension_numbers = #tpu.dot_dimension_numbers<[1], [0], [0], [1], [0, 0, 1, 1], [], []>} : vector<16x16xbf16>, vector<16x16xbf16>, vector<16x16xf32> -> vector<16x16xf32>
    %c0_39 = arith.constant 0 : index
    %c32 = arith.constant 32 : index
    %120 = vector.load %arg14[%c0_39, %c32] : memref<16x64xf32, #tpu.memory_space<vmem>>, vector<16x16xf32>
    tpu.vector_store %arg14[%c0_39, %c32], %119 {strides = array<i32>} : memref<16x64xf32, #tpu.memory_space<vmem>>, vector<16x16xf32>,
    %121 = vector.extract_strided_slice %45 {offsets = [0, 48], sizes = [16, 16], strides = [1, 1]} : vector<16x64xbf16> to vector<16x16xbf16>
    %122 = vector.extract_strided_slice %58 {offsets = [0, 48], sizes = [16, 16], strides = [1, 1]} : vector<16x64xbf16> to vector<16x16xbf16>
    %cst_40 = arith.constant dense<0.000000e+00> : vector<16x16xf32>
    %123 = tpu.matmul %121, %122, %cst_40 {dimension_numbers = #tpu.dot_dimension_numbers<[1], [1], [0], [0], [0, 0, 1, 0], [], []>} : vector<16x16xbf16>, vector<16x16xbf16>, vector<16x16xf32> -> vector<16x16xf32>
    %cst_41 = arith.constant -1.000000e+30 : f32
    %124 = vector.broadcast %cst_41 : f32 to vector<16x16xf32>
    %125 = arith.select %63, %123, %124 : vector<16x16xi1>, vector<16x16xf32>
    %cst_42 = arith.constant dense<0xFF800000> : vector<16xf32>
    %126 = vector.multi_reduction <maximumf>, %125, %cst_42 [1] : vector<16x16xf32> to vector<16xf32>
    %127 = vector.shape_cast %126 : vector<16xf32> to vector<16x1xf32>
    %128 = vector.broadcast %127 : vector<16x1xf32> to vector<16x16xf32>
    %129 = arith.subf %125, %128 : vector<16x16xf32>
    %130 = math.exp %129 : vector<16x16xf32>
    %cst_43 = arith.constant dense<0.000000e+00> : vector<16xf32>
    %131 = vector.multi_reduction <add>, %130, %cst_43 [1] : vector<16x16xf32> to vector<16xf32>
    %132 = vector.shape_cast %131 : vector<16xf32> to vector<16x1xf32>
    %133 = tpu.reciprocal %132 {approx = true} : vector<16x1xf32> -> vector<16x1xf32>
    %134 = vector.broadcast %133 : vector<16x1xf32> to vector<16x16xf32>
    %135 = arith.mulf %130, %134 : vector<16x16xf32>
    %136 = arith.truncf %135 : vector<16x16xf32> to vector<16x16xbf16>
    %137 = vector.extract_strided_slice %60 {offsets = [0, 48], sizes = [16, 16], strides = [1, 1]} : vector<16x64xbf16> to vector<16x16xbf16>
    %cst_44 = arith.constant dense<0.000000e+00> : vector<16x16xf32>
    %138 = tpu.matmul %136, %137, %cst_44 {dimension_numbers = #tpu.dot_dimension_numbers<[1], [0], [0], [1], [0, 0, 1, 1], [], []>} : vector<16x16xbf16>, vector<16x16xbf16>, vector<16x16xf32> -> vector<16x16xf32>
    %c0_45 = arith.constant 0 : index
    %c48 = arith.constant 48 : index
    %139 = vector.load %arg14[%c0_45, %c48] : memref<16x64xf32, #tpu.memory_space<vmem>>, vector<16x16xf32>
    tpu.vector_store %arg14[%c0_45, %c48], %138 {strides = array<i32>} : memref<16x64xf32, #tpu.memory_space<vmem>>, vector<16x16xf32>,
    %c0_46 = arith.constant 0 : index
    %c0_47 = arith.constant 0 : index
    %140 = vector.load %arg14[%c0_46, %c0_47] : memref<16x64xf32, #tpu.memory_space<vmem>>, vector<16x64xf32>
    %141 = arith.truncf %140 : vector<16x64xf32> to vector<16x64xbf16>
    %c0_48 = arith.constant 0 : index
    %c0_49 = arith.constant 0 : index
    %142 = vector.load %arg6[%c0_48, %c0_49] : memref<64x64xbf16, #tpu.memory_space<vmem>>, vector<64x64xbf16>
    %cst_50 = arith.constant dense<0.000000e+00> : vector<16x64xf32>
    %143 = tpu.matmul %141, %142, %cst_50 {dimension_numbers = #tpu.dot_dimension_numbers<[1], [0], [0], [1], [0, 0, 1, 1], [], []>} : vector<16x64xbf16>, vector<64x64xbf16>, vector<16x64xf32> -> vector<16x64xf32>
    %c0_51 = arith.constant 0 : index
    %c0_52 = arith.constant 0 : index
    %144 = vector.load %arg7[%c0_51, %c0_52] : memref<1x64xf32, #tpu.memory_space<vmem>>, vector<1x64xf32>
    %145 = vector.broadcast %144 : vector<1x64xf32> to vector<16x64xf32>
    %146 = arith.addf %143, %145 : vector<16x64xf32>
    %147 = vector.extract_strided_slice %29 {offsets = [0, 0], sizes = [16, 256], strides = [1, 1]} : vector<16x448xf32> to vector<16x256xf32>
    %cst_53 = arith.constant 5.000000e-01 : f32
    %148 = vector.broadcast %cst_53 : f32 to vector<16x256xf32>
    %149 = arith.mulf %148, %147 : vector<16x256xf32>
    %cst_54 = arith.constant 0.707106769 : f32
    %150 = vector.broadcast %cst_54 : f32 to vector<16x256xf32>
    %151 = arith.mulf %147, %150 : vector<16x256xf32>
    %152 = math.absf %151 : vector<16x256xf32>
    %cst_55 = arith.constant 0.327591091 : f32
    %153 = vector.broadcast %cst_55 : f32 to vector<16x256xf32>
    %154 = arith.mulf %153, %152 : vector<16x256xf32>
    %cst_56 = arith.constant 1.000000e+00 : f32
    %155 = vector.broadcast %cst_56 : f32 to vector<16x256xf32>
    %156 = arith.addf %155, %154 : vector<16x256xf32>
    %cst_57 = arith.constant 1.000000e+00 : f32
    %157 = vector.broadcast %cst_57 : f32 to vector<16x256xf32>
    %158 = arith.divf %157, %156 : vector<16x256xf32>
    %cst_58 = arith.constant 1.06140542 : f32
    %159 = vector.broadcast %cst_58 : f32 to vector<16x256xf32>
    %160 = arith.mulf %159, %158 : vector<16x256xf32>
    %cst_59 = arith.constant -1.45315206 : f32
    %161 = vector.broadcast %cst_59 : f32 to vector<16x256xf32>
    %162 = arith.addf %160, %161 : vector<16x256xf32>
    %163 = arith.mulf %162, %158 : vector<16x256xf32>
    %cst_60 = arith.constant 1.42141378 : f32
    %164 = vector.broadcast %cst_60 : f32 to vector<16x256xf32>
    %165 = arith.addf %163, %164 : vector<16x256xf32>
    %166 = arith.mulf %165, %158 : vector<16x256xf32>
    %cst_61 = arith.constant -0.284496725 : f32
    %167 = vector.broadcast %cst_61 : f32 to vector<16x256xf32>
    %168 = arith.addf %166, %167 : vector<16x256xf32>
    %169 = arith.mulf %168, %158 : vector<16x256xf32>
    %cst_62 = arith.constant 0.254829586 : f32
    %170 = vector.broadcast %cst_62 : f32 to vector<16x256xf32>
    %171 = arith.addf %169, %170 : vector<16x256xf32>
    %172 = arith.mulf %171, %158 : vector<16x256xf32>
    %cst_63 = arith.constant 0.000000e+00 : f32
    %173 = vector.broadcast %cst_63 : f32 to vector<16x256xf32>
    %174 = arith.subf %173, %152 : vector<16x256xf32>
    %175 = arith.mulf %174, %152 : vector<16x256xf32>
    %176 = math.exp %175 : vector<16x256xf32>
    %177 = arith.mulf %172, %176 : vector<16x256xf32>
    %cst_64 = arith.constant 1.000000e+00 : f32
    %178 = vector.broadcast %cst_64 : f32 to vector<16x256xf32>
    %179 = arith.subf %178, %177 : vector<16x256xf32>
    %cst_65 = arith.constant 0.000000e+00 : f32
    %180 = vector.broadcast %cst_65 : f32 to vector<16x256xf32>
    %181 = arith.cmpf oge, %151, %180 : vector<16x256xf32>
    %cst_66 = arith.constant 0.000000e+00 : f32
    %182 = vector.broadcast %cst_66 : f32 to vector<16x256xf32>
    %183 = arith.subf %182, %179 : vector<16x256xf32>
    %184 = arith.select %181, %179, %183 : vector<16x256xi1>, vector<16x256xf32>
    %cst_67 = arith.constant 1.000000e+00 : f32
    %185 = vector.broadcast %cst_67 : f32 to vector<16x256xf32>
    %186 = arith.addf %185, %184 : vector<16x256xf32>
    %187 = arith.mulf %149, %186 : vector<16x256xf32>
    %188 = arith.truncf %187 : vector<16x256xf32> to vector<16x256xbf16>
    %c0_68 = arith.constant 0 : index
    %c0_69 = arith.constant 0 : index
    %189 = vector.load %arg8[%c0_68, %c0_69] : memref<256x64xbf16, #tpu.memory_space<vmem>>, vector<256x64xbf16>
    %cst_70 = arith.constant dense<0.000000e+00> : vector<16x64xf32>
    %190 = tpu.matmul %188, %189, %cst_70 {dimension_numbers = #tpu.dot_dimension_numbers<[1], [0], [0], [1], [0, 0, 1, 1], [], []>} : vector<16x256xbf16>, vector<256x64xbf16>, vector<16x64xf32> -> vector<16x64xf32>
    %c0_71 = arith.constant 0 : index
    %c0_72 = arith.constant 0 : index
    %191 = vector.load %arg9[%c0_71, %c0_72] : memref<1x64xf32, #tpu.memory_space<vmem>>, vector<1x64xf32>
    %192 = vector.broadcast %191 : vector<1x64xf32> to vector<16x64xf32>
    %193 = arith.addf %190, %192 : vector<16x64xf32>
    %194 = arith.addf %193, %146 : vector<16x64xf32>
    %195 = arith.addf %194, %1 : vector<16x64xf32>
    %c0_73 = arith.constant 0 : index
    %c0_74 = arith.constant 0 : index
    %c0_75 = arith.constant 0 : index
    %196 = vector.load %arg13[%c0_73, %c0_74, %c0_75] : memref<1x16x64xf32, #tpu.memory_space<vmem>>, vector<1x16x64xf32>
    %197 = vector.shape_cast %196 : vector<1x16x64xf32> to vector<16x64xf32>
    %198 = vector.shape_cast %195 : vector<16x64xf32> to vector<1x16x64xf32>
    tpu.vector_store %arg13[%c0_73, %c0_74, %c0_75], %198 {strides = array<i32>} : memref<1x16x64xf32, #tpu.memory_space<vmem>>, vector<1x16x64xf32>,
    return
  }
  func.func @transform_0(%arg0: i32) -> (i32, i32, i32) {
    %c0_i32 = arith.constant 0 : i32
    %c0_i32_0 = arith.constant 0 : i32
    %c0_i32_1 = arith.constant 0 : i32
    return %arg0, %c0_i32, %c0_i32_0 : i32, i32, i32
  }
  func.func @transform_1(%arg0: i32) -> (i32, i32) {
    %c0_i32 = arith.constant 0 : i32
    %c0_i32_0 = arith.constant 0 : i32
    %c0_i32_1 = arith.constant 0 : i32
    return %c0_i32, %c0_i32_0 : i32, i32
  }
  func.func @transform_2(%arg0: i32) -> (i32, i32) {
    %c0_i32 = arith.constant 0 : i32
    %c0_i32_0 = arith.constant 0 : i32
    %c0_i32_1 = arith.constant 0 : i32
    return %c0_i32, %c0_i32_0 : i32, i32
  }
  func.func @transform_3(%arg0: i32) -> (i32, i32) {
    %c0_i32 = arith.constant 0 : i32
    %c0_i32_0 = arith.constant 0 : i32
    %c0_i32_1 = arith.constant 0 : i32
    return %c0_i32, %c0_i32_0 : i32, i32
  }
  func.func @transform_4(%arg0: i32) -> (i32, i32) {
    %c0_i32 = arith.constant 0 : i32
    %c0_i32_0 = arith.constant 0 : i32
    %c0_i32_1 = arith.constant 0 : i32
    return %c0_i32, %c0_i32_0 : i32, i32
  }
  func.func @transform_5(%arg0: i32) -> (i32, i32) {
    %c0_i32 = arith.constant 0 : i32
    %c0_i32_0 = arith.constant 0 : i32
    %c0_i32_1 = arith.constant 0 : i32
    return %c0_i32, %c0_i32_0 : i32, i32
  }
  func.func @transform_6(%arg0: i32) -> (i32, i32) {
    %c0_i32 = arith.constant 0 : i32
    %c0_i32_0 = arith.constant 0 : i32
    %c0_i32_1 = arith.constant 0 : i32
    return %c0_i32, %c0_i32_0 : i32, i32
  }
  func.func @transform_7(%arg0: i32) -> (i32, i32) {
    %c0_i32 = arith.constant 0 : i32
    %c0_i32_0 = arith.constant 0 : i32
    %c0_i32_1 = arith.constant 0 : i32
    return %c0_i32, %c0_i32_0 : i32, i32
  }
  func.func @transform_8(%arg0: i32) -> (i32, i32) {
    %c0_i32 = arith.constant 0 : i32
    %c0_i32_0 = arith.constant 0 : i32
    %c0_i32_1 = arith.constant 0 : i32
    return %c0_i32, %c0_i32_0 : i32, i32
  }
  func.func @transform_9(%arg0: i32) -> (i32, i32) {
    %c0_i32 = arith.constant 0 : i32
    %c0_i32_0 = arith.constant 0 : i32
    %c0_i32_1 = arith.constant 0 : i32
    return %c0_i32, %c0_i32_0 : i32, i32
  }
  func.func @transform_10(%arg0: i32) -> (i32, i32) {
    %c0_i32 = arith.constant 0 : i32
    %c0_i32_0 = arith.constant 0 : i32
    %c0_i32_1 = arith.constant 0 : i32
    return %c0_i32, %c0_i32_0 : i32, i32
  }
  func.func @transform_11(%arg0: i32) -> (i32, i32) {
    %c0_i32 = arith.constant 0 : i32
    %c0_i32_0 = arith.constant 0 : i32
    %c0_i32_1 = arith.constant 0 : i32
    return %c0_i32, %c0_i32_0 : i32, i32
  }
  func.func @transform_12(%arg0: i32) -> (i32, i32, i32) {
    %c0_i32 = arith.constant 0 : i32
    %c0_i32_0 = arith.constant 0 : i32
    %c0_i32_1 = arith.constant 0 : i32
    return %arg0, %c0_i32, %c0_i32_0 : i32, i32, i32
  }
}

</mosaic_0001>

<bundles_post_ra>
// kernel: gpt_neox_layer_forward.1
= control target key start
LH: loop header
LB: loop body
LE: loop exit
PB: predicated region body
PF: predicated region fallthrough
CT: control target
= control target key end

     0   :  { %17 = vsyncpa [#allocation4], 0  ;;  %s2896_s0 = inlined_call_operand.vmem [shape: f32[2,16,64], index: 0, kind: input, shape index: {}]   ;;  %s2897_s1 = inlined_call_operand.vmem [shape: f32[1,64], index: 1, kind: input, shape index: {}]   ;;  %s2898_s2 = inlined_call_operand.vmem [shape: f32[1,64], index: 2, kind: input, shape index: {}]   ;;  %s2899_s3 = inlined_call_operand.vmem [shape: bf16[64,448], index: 3, kind: input, shape index: {}]   ;;  %s2900_s4 = inlined_call_operand.vmem [shape: f32[1,448], index: 4, kind: input, shape index: {}]   ;;  %s2901_s5 = inlined_call_operand.vmem [shape: bf16[64,64], index: 5, kind: input, shape index: {}]   ;;  %s2902_s6 = inlined_call_operand.vmem [shape: f32[1,64], index: 6, kind: input, shape index: {}]   ;;  %s2903_s7 = inlined_call_operand.vmem [shape: bf16[256,64], index: 7, kind: input, shape index: {}]   ;;  %s2904_s8 = inlined_call_operand.vmem [shape: f32[1,64], index: 8, kind: input, shape index: {}]   ;;  %s2905_s9 = inlined_call_operand.vmem [shape: f32[16,64], index: 9, kind: input, shape index: {}]   ;;  %s2906_s10 = inlined_call_operand.hbm [shape: f32[16,64], index: 10, kind: input, shape index: {}]   ;;  %s2907_s11 = inlined_call_operand.hbm [shape: f32[16,64], index: 11, kind: input, shape index: {}]   ;;  %s2908_s12 = inlined_call_operand.hbm [shape: f32[2,16,64], index: 12, kind: output, shape index: {}]  }
   0x1   :  { %18 = vsyncpa [#allocation7], 0 }
   0x2   :  { %19 = vsyncpa [#allocation5], 0 }
   0x3   :  { %21 = vsyncpa [#allocation5 + $0x1], 0  ;;  %s2357_s21 = smov 0   ;;  %s2359_s22 = smov 0  }
   0x4   :  { %s2361_s23 = smov 0   ;;  %s2363_s24 = smov 0  }
   0x5 LB: > { %2918 = sst [smem:[#allocation12_spill]] %s2258_s21  ;;  %s2378_s25 = sadd.s32 4294967295, %s2270_s24   ;;  %s2270_s24 = sphi %s2363_s24, %s2938_s24   ;;  %s2266_s23 = sphi %s2361_s23, %s2940_s23   ;;  %s2262_s22 = sphi %s2359_s22, %s2942_s22   ;;  %s2258_s21 = sphi %s2357_s21, %s2941_s21  }
   0x6   : > { %2919 = sst [smem:[#allocation13_spill]] %s2266_s23  ;;  %s1797_s26 = sadd.s32 4294967294, %s2270_s24  }
   0x7   : > { %2920 = sst [smem:[#allocation14_spill]] %s2270_s24  ;;  %s2382_s27 = sadd.s32 1, %s2270_s24  }
   0x8   : > { %2921 = sst [smem:[#allocation15_spill]] %s2382_s27  ;;  %s291_s28 = sadd.s32 1, %s2266_s23 }
   0x9   : > { %s288_s29 = ssub.s32 %s2270_s24, %s2382_s27  ;;  %p301_p0 = scmp.ne.s32.totalorder %s2266_s23, %s2262_s22 }
   0xa   : > { %p289_p1 = scmp.eq.s32.totalorder %s288_s29, 0  ;;  %p302_p2 = scmp.eq.s32.totalorder %s2378_s25, 1 }
   0xb   : > { %p307_p3 = scmp.ne.s32.totalorder %s2262_s22, %s2258_s21  ;;  %p308_p4 = scmp.eq.s32.totalorder %s1797_s26, 1 }
   0xc   : > { %s2393_s30 = scalar_select %p289_p1, %s2266_s23, %s291_s28  }
   0xd   : > { %p2395_p5 = por %p302_p2, %p301_p0  ;;  %p2399_p6 = por %p308_p4, %p307_p3 }
   0xe   : > { %2922 = sst [smem:[#allocation16_spill]] %s2393_s30  ;;  %p1798_p7 = scmp.ge.s32.totalorder %s2270_s24, 1 }
   0xf   : > { %s2923_s13 = scalar_select %p2395_p5, 1, 0 }
  0x10   : > { %s2924_s14 = scalar_select %p2399_p6, 1, 0 }
  0x11   : > { %p315_p8 = scmp.lt.s32.totalorder %s2270_s24, 3  ;;  %p2912_p9 = scmp.eq.s32.totalorder %s2378_s25, 0 }
  0x12   : > { %2925 = sst [smem:[#allocation17_spill]] %s2924_s14  ;;  %s2272_s16 = smov [#allocation3]  }
  0x13   : > { %p2406_p10 = pnand %p1798_p7, %p315_p8  ;;  %s354_s17 = sshll.u32 %s2272_s16, 4  ;;  %s355_s17 = int_to_ptr.vmem [resolvable:$true] %s354_s17 }
  0x14   : > { %s2273_s19 = smov [#allocation6]   ;;  %s2144_s29 = scalar_lea.hbm %s2906_s10, 256 }
  0x15   : > { %s2926_s15 = scalar_select %p2406_p10, 1, 0 }
  0x16   : > { %p1979_p11 = pneg %p2406_p10  ;;  %s367_s20 = sshll.u32 %s2273_s19, 4  ;;  %s2418_s20 = int_to_ptr.vmem [resolvable:$true] %s367_s20 }
  0x17   : > { %p2145_p13 = scmp.ne.s32.totalorder %s2906_s10, %s2144_s29  ;;  %p2151_p3 = scmp.lt.u32.totalorder %s2144_s29, %s2906_s10 }
  0x18   : > { %p2414_p12 = pnand %p2912_p9, %p1979_p11 }
  0x1a   : > { %p2146_p0 = pneg %p2414_p12 }
  0x1c   : > { %p2147_p1 = pnand %p2146_p0, %p2145_p13 }
  0x1e   : > { %p2148_p2 = pneg %p2147_p1 }
  0x20   : > { %p2153_p4 = pnand %p2151_p3, %p2148_p2 }
  0x22   : > { %2156 = shalt.err (!%p2153_p4)
}
  0x23   : > { %s2157_s19 = scalar_lea.vmem %s355_s17, 256  ;;  %p2165_p9 = scmp.lt.s32.totalorder %s355_s17, %s355_s17 }
  0x24   : > { %p2158_p7 = scmp.ne.s32.totalorder %s355_s17, %s2157_s19  ;;  %p2166_p6 = scmp.lt.s32.totalorder %s2157_s19, %s2157_s19 }
  0x26   : > { %p2160_p8 = pnand %p2158_p7, %p2146_p0  ;;  %p2167_p5 = por %p2166_p6, %p2165_p9 }
  0x28   : > { %p2161_p11 = pneg %p2160_p8 }
  0x2a   : > { %p2168_p10 = pnand %p2167_p5, %p2161_p11 }
  0x2c   : > { %2171 = shalt.err (!%p2168_p10)
}
  0x2d   : > { %s2274_s30 = smov 128   ;;  %s2275_s26 = smov 8  }
  0x2e   : > { %1982 = dma.hbm_to_vmem [thread:$0]  (!%p2414_p12), %s2906_s10, 256, %s355_s17, [#allocation4], %s2274_s30, %s2274_s30, %s2275_s26  }
  0x2f   : > { %s2172_s16 = scalar_lea.hbm %s2907_s11, 256 }
  0x30   : > { %p2173_p13 = scmp.ne.s32.totalorder %s2907_s11, %s2172_s16  ;;  %p2179_p9 = scmp.lt.u32.totalorder %s2172_s16, %s2907_s11 }
  0x32   : > { %p2175_p5 = pnand %p2173_p13, %p2146_p0 }
  0x34   : > { %p2176_p6 = pneg %p2175_p5 }
  0x36   : > { %p2181_p10 = pnand %p2179_p9, %p2176_p6 }
  0x38   : > { %2184 = shalt.err (!%p2181_p10)
}
  0x39   : > { %s2185_s17 = scalar_lea.vmem %s2418_s20, 256  ;;  %p2193_p4 = scmp.lt.s32.totalorder %s2418_s20, %s2418_s20 }
  0x3a   : > { %p2186_p1 = scmp.ne.s32.totalorder %s2418_s20, %s2185_s17  ;;  %p2194_p7 = scmp.lt.s32.totalorder %s2185_s17, %s2185_s17 }
  0x3c   : > { %p2188_p2 = pnand %p2186_p1, %p2146_p0  ;;  %p2195_p8 = por %p2194_p7, %p2193_p4 }
  0x3e   : > { %p2189_p3 = pneg %p2188_p2 }
  0x40   : > { %p2196_p11 = pnand %p2195_p8, %p2189_p3 }
  0x42   : > { %2199 = shalt.err (!%p2196_p11)
}
  0x43   : > { %1985 = dma.hbm_to_vmem [thread:$0]  (!%p2414_p12), %s2907_s11, 256, %s2418_s20, [#allocation7], %s2274_s30, %s2274_s30, %s2275_s26  }
  0x44   : > { %p2928_p13 = scmp.ne.s32.totalorder %s2926_s15, 0 }
  0x45   : > { %p2929_p5 = scmp.eq.s32.totalorder (!%p2928_p13), %s2378_s25, 0 }
  0x46   : > { %391 = sbr.rel (%p2928_p13) target bundleno = 2662 (0xa66), region = 68 }
  0x4d   : > { %2245 = dma.done.wait (%p2929_p5), [#allocation4], 256   ;;  %p2930_p0 = pmov %p2929_p5 }
  0x4f   : > { %2247 = vsyncadd (%p2930_p0), [#allocation4], 4294967040  ;;  %p2931_p6 = pmov %p2930_p0 }
  0x50   : > { %p2932_p9 = pmov %p2930_p0 }
  0x51   : > { %2249 = dma.done.wait (%p2931_p6), [#allocation7], 256  }
  0x52   : > { %2251 = vsyncadd (%p2932_p9), [#allocation7], 4294967040  ;;  %p437_p10 = scmp.lt.s32.totalorder %s2378_s25, 1  ;;  %vm445_vm0 = vcmask 523264   ;;  %v2046_v14 = vld [vmem:[%s2899_s3 + $0x4] ss:$16 sps:$4 sm:$0xff]   ;;  %v510_v48 = vlaneseq }
  0x53   : > { %v2048_v15 = vld [vmem:[%s2899_s3 + $0xc] ss:$16 sps:$4 sm:$0xff]   ;;  %v2050_v16 = vld [vmem:[%s2899_s3] ss:$16 sps:$4 sm:$0xff]   ;;  %v2051_v17 = vld [vmem:[%s2899_s3 + $0x8] ss:$16 sps:$4 sm:$0xff]   ;;  %613 = vmatprep.subr.bf16.mxu0 %v2046_v14 }
  0x54   : > { %s438_s14 = scalar_select %p437_p10, %s2378_s25, 1  ;;  %656 = vmatprep.subr.bf16.mxu1 %v2048_v15  ;;  %614 = vmatpush1.bf16.msra.mxu0 %v2050_v16  ;;  %v2052_v18 = vld [vmem:[%s2899_s3 + $0x24] ss:$16 sps:$4 sm:$0xff]   ;;  %v2054_v19 = vld [vmem:[%s2899_s3 + $0x2c] ss:$16 sps:$4 sm:$0xff]   ;;  %v2276_v30 = vmov 0  }
  0x55   : > { %657 = vmatpush1.bf16.msra.mxu1 %v2051_v17  ;;  %v2056_v20 = vld [vmem:[%s2899_s3 + $0x20] ss:$16 sps:$4 sm:$0xff]   ;;  %v2057_v21 = vld [vmem:[%s2899_s3 + $0x28] ss:$16 sps:$4 sm:$0xff]   ;;  %615 = vmatprep.subr.bf16.mxu0 %v2052_v18  ;;  %v2058_v22 = vld [vmem:[%s2899_s3 + $0x44] ss:$16 sps:$4 sm:$0xff]  }
  0x56   : > { %s1864_s18 = sshll.u32 %s438_s14, 4  ;;  %658 = vmatprep.subr.bf16.mxu1 %v2054_v19  ;;  %v2060_v23 = vld [vmem:[%s2899_s3 + $0x4c] ss:$16 sps:$4 sm:$0xff]   ;;  %v2062_v24 = vld [vmem:[%s2899_s3 + $0x40] ss:$16 sps:$4 sm:$0xff]   ;;  %645 = vmatprep.mubr.bf16.mxu0 %v2276_v30  ;;  %v2547_v49 = vshrl.u32 %v510_v48, 7 }
  0x57   : > { %s2482_s30 = scalar_lea.vmem %s2896_s0, %s1864_s18  ;;  %v2063_v25 = vld [vmem:[%s2899_s3 + $0x48] ss:$16 sps:$4 sm:$0xff]   ;;  %v2064_v26 = vld [vmem:[%s2899_s3 + $0x64] ss:$16 sps:$4 sm:$0xff]   ;;  %v2066_v27 = vld [vmem:[%s2899_s3 + $0x6c] ss:$16 sps:$4 sm:$0xff]   ;;  %688 = vmatprep.mubr.bf16.mxu1 %v2276_v30 }
  0x58   : > { %v443_v0 = vld [vmem:[%s2482_s30] sm:$0xff]  ;;  %v444_v1 = vld [vmem:[%s2482_s30 + $0x8] sm:$0xff]  ;;  %616 = vmatpush1.bf16.msra.mxu0 %v2056_v20  ;;  %v512_v50 = vsub.s32 0, %v2547_v49  ;;  %v520_v51 = vsub.s32 2, %v2547_v49  ;;  %v516_v53 = vsub.s32 1, %v2547_v49  ;;  %v524_v54 = vsub.s32 3, %v2547_v49 }
  0x59   : > { %v446_v2 = vsel %vm445_vm0, %v443_v0, 0.0  ;;  %v449_v3 = vsel %vm445_vm0, %v444_v1, 0.0  ;;  %659 = vmatpush1.bf16.msra.mxu1 %v2057_v21  ;;  %617 = vmatprep.subr.bf16.mxu0 %v2058_v22  ;;  %v2068_v28 = vld [vmem:[%s2899_s3 + $0x60] ss:$16 sps:$4 sm:$0xff]   ;;  %v2069_v29 = vld [vmem:[%s2899_s3 + $0x68] ss:$16 sps:$4 sm:$0xff]  }
  0x5a   : > { %447 = vadd.xlane.f32.xlu0 %v446_v2  ;;  %660 = vmatprep.subr.bf16.mxu1 %v2060_v23  ;;  %v1808_v39 = vld [vmem:[%s2897_s1] ss:$0 sm:$0xff]  ;;  %s2277_s14 = smov 56   ;;  %s2278_s18 = smov 120   ;;  %vm719_vm5 = vcmask 457728   ;;  %vm734_vm6 = vcmask 64512  }
  0x5b   : > { %v1809_v43 = vld [vmem:[%s2898_s2] ss:$0 sm:$0xff]  ;;  %s2279_s20 = smov 72   ;;  %s2280_s15 = smov 8   ;;  %vm2283_vm7 = vmmov 0   ;;  %vm798_vm8 = vcmask 130048  }
  0x5c   : > { %618 = vmatpush1.bf16.msra.mxu0 %v2062_v24  ;;  %v508_v52 = vld [vmem:[%s2900_s4] sm:$0xf]  ;;  %s2281_s27 = smov 64   ;;  %s2284_s16 = smov 48   ;;  %vm1050_vm11 = vcmask 261248   ;;  %vm1184_vm12 = vcmask 392448  }
  0x5d   : > { %661 = vmatpush1.bf16.msra.mxu1 %v2063_v25  ;;  %619 = vmatprep.subr.bf16.mxu0 %v2064_v26  ;;  %v513_v55 = vrot.slane %v508_v52, %v512_v50  ;;  %v521_v56 = vrot.slane %v508_v52, %v520_v51  ;;  %v517_v57 = vrot.slane %v508_v52, %v516_v53  ;;  %s2285_s19 = smov 32   ;;  %s2286_s17 = smov 96   ;;  %vm1318_vm13 = vcmask 523648  }
  0x5e   : > { %450 = vadd.xlane.f32.xlu0 %v449_v3  ;;  %662 = vmatprep.subr.bf16.mxu1 %v2066_v27  ;;  %v525_v60 = vrot.slane %v508_v52, %v524_v54  ;;  %s2287_s21 = smov 16   ;;  %s2288_s24 = smov 112  }
  0x5f   : > { %s1865_s23 = sshll.u32 %s2378_s25, 8  ;;  %p2933_p1 = scmp.ne.s32.totalorder %s2923_s13, 0 }
  0x60   : > { %620 = vmatpush1.bf16.msra.mxu0 %v2068_v28  ;;  %v2596_v28 = vld [vmem:[%s2905_s9] sm:$0xff] }
  0x61   : > { %663 = vmatpush1.bf16.msra.mxu1 %v2069_v29 }
  0xe7   : > { %v448_v4 = vpop.xlane.xlu0 %447 }
  0xe8   : > { %v453_v5 = vmul.f32 0.015625, %v448_v4 }
  0xea   : > { %v455_v6 = vsub.f32 %v443_v0, %v453_v5 }
  0xeb   : > { %v451_v7 = vpop.xlane.xlu0 %450 }
  0xec   : > { %v454_v8 = vmul.f32 0.015625, %v451_v7  ;;  %v457_v9 = vmul.f32 %v455_v6, %v455_v6 }
  0xee   : > { %v456_v10 = vsub.f32 %v444_v1, %v454_v8  ;;  %v459_v11 = vsel %vm445_vm0, %v457_v9, 0.0 }
  0xef   : > { %460 = vadd.xlane.f32.xlu1 %v459_v11 }
  0xf0   : > { %v458_v12 = vmul.f32 %v456_v10, %v456_v10 }
  0xf2   : > { %v462_v13 = vsel %vm445_vm0, %v458_v12, 0.0 }
  0xf3   : > { %463 = vadd.xlane.f32.xlu1 %v462_v13 }
 0x17c   : > { %v461_v31 = vpop.xlane.xlu1 %460 }
 0x17d   : > { %v465_v32 = vmul.f32 0.015625, %v461_v31 }
 0x17f   : > { %v467_v33 = vadd.f32 1e-05, %v465_v32 }
 0x180   : > { %v464_v34 = vpop.xlane.xlu1 %463 }
 0x181   : > { %2090 = vrsqrt.f32 %v467_v33  ;;  %v466_v35 = vmul.f32 0.015625, %v464_v34 }
 0x183   : > { %v468_v36 = vadd.f32 1e-05, %v466_v35 }
 0x185   : > { %2092 = vrsqrt.f32 %v468_v36 }
 0x18b   : > { %v2091_v37 = vpop.eup %2090 }
 0x18c   : > { %v471_v38 = vmul.f32 %v2091_v37, %v455_v6  ;;  %v2606_v37 = vld [vmem:[%s2905_s9 + $0x8] sm:$0xff] }
 0x18e   : > { %v480_v42 = vmul.f32 %v1808_v39, %v471_v38 }
 0x18f   : > { %v2093_v40 = vpop.eup %2092 }
 0x190   : > { %v472_v41 = vmul.f32 %v2093_v40, %v456_v10  ;;  %v489_v45 = vadd.f32 %v1809_v43, %v480_v42 }
 0x192   : > { %v481_v44 = vmul.f32 %v1808_v39, %v472_v41 }
 0x194   : > { %v490_v46 = vadd.f32 %v1809_v43, %v481_v44 }
 0x196   : > { %v491_v47 = vpack.c.bf16 %v490_v46, %v489_v45 }
 0x198   : > { %1826 = vmatmul.mubr.msk.bf16.vlgmr.msra.gmra.mrb[0].mxu0 %vm445_vm0, %v491_v47  ;;  %1827 = vmatmul.mubr.msk.bf16.vlgmr.msra.gmra.mrb[0].mxu1 %vm445_vm0, %v491_v47 }
 0x26b   : > { %v647_v58 = vpop.f32.mrb[0].mxu0  ;;  %v690_v59 = vpop.f32.mrb[0].mxu1 }
 0x26c   : > { %v2556_v61 = vadd.f32 %v647_v58, %v513_v55  ;;  %v2558_v62 = vadd.f32 %v690_v59, %v521_v56  ;;  %v649_v63 = vpop.f32.mrb[1].mxu0  ;;  %v692_v0 = vpop.f32.mrb[1].mxu1 }
 0x26d   : > { %v2560_v1 = vadd.f32 %v649_v63, %v517_v57  ;;  %v651_v2 = vpop.f32.mrb[2].mxu0  ;;  %v694_v3 = vpop.f32.mrb[2].mxu1  ;;  %v693_v9 = vadd.f32 %v692_v0, %v525_v60 }
 0x26e   : > { %v2563_v4 = vmul.f32 0.70710677, %v2556_v61  ;;  %v2565_v5 = vadd.f32 %v651_v2, %v513_v55  ;;  %v696_v6 = vpop.f32.mrb[3].mxu1  ;;  %713 = vrot.lane.b32.xlu1 %v2558_v62, %s2277_s14  ;;  %707 = vrot.lane.b32.xlu0 %v2558_v62, %s2278_s18  ;;  %v653_v7 = vpop.f32.mrb[3].mxu0  ;;  %v2578_v14 = vadd.f32 %v694_v3, %v521_v56 }
 0x26f   : > { %v2570_v8 = vmul.f32 0.70710677, %v2560_v1  ;;  %v697_v10 = vadd.f32 %v696_v6, %v525_v60  ;;  %v2572_v11 = vadd.f32 %v653_v7, %v517_v57 }
 0x270   : > { %v1415_v12 = vand.u32 2147483647, %v2563_v4  ;;  %v2576_v13 = vmul.f32 0.70710677, %v2565_v5  ;;  %vm1495_vm1 = vcmp.ge.f32.partialorder %v2563_v4, 0.0 }
 0x271   : > { %v1416_v15 = vand.u32 2147483647, %v2570_v8  ;;  %v2581_v16 = vpack.c.bf16 %v697_v10, %v693_v9  ;;  %v2587_v20 = vmul.f32 0.70710677, %v2572_v11  ;;  %vm1496_vm2 = vcmp.ge.f32.partialorder %v2570_v8, 0.0 }
 0x272   : > { %v1419_v17 = vmul.f32 0.3275911, %v1415_v12  ;;  %v1417_v18 = vand.u32 2147483647, %v2576_v13  ;;  %709 = vrot.lane.b32.xlu1 %v2578_v14, %s2278_s18  ;;  %722 = vrot.lane.b32.xlu0 %v2558_v62, %s2279_s20  ;;  %v1471_v29 = vsub.f32 0.0, %v1415_v12  ;;  %vm1497_vm3 = vcmp.ge.f32.partialorder %v2576_v13, 0.0 }
 0x273   : > { %v1420_v19 = vmul.f32 0.3275911, %v1416_v15  ;;  %v1418_v24 = vand.u32 2147483647, %v2587_v20  ;;  %v1472_v30 = vsub.f32 0.0, %v1416_v15  ;;  %vm1498_vm4 = vcmp.ge.f32.partialorder %v2587_v20, 0.0 }
 0x274   : > { %v1423_v21 = vadd.f32 1.0, %v1419_v17  ;;  %v1421_v22 = vmul.f32 0.3275911, %v1417_v18  ;;  %v1475_v32 = vmul.f32 %v1471_v29, %v1415_v12  ;;  %v1473_v33 = vsub.f32 0.0, %v1417_v18 }
 0x275   : > { %v1424_v23 = vadd.f32 1.0, %v1420_v19  ;;  %v1422_v26 = vmul.f32 0.3275911, %v1418_v24  ;;  %v1476_v36 = vmul.f32 %v1472_v30, %v1416_v15  ;;  %v1474_v39 = vsub.f32 0.0, %v1418_v24 }
 0x276   : > { %2094 = vrcp.f32 %v1423_v21  ;;  %v1425_v25 = vadd.f32 1.0, %v1421_v22  ;;  %715 = vrot.lane.b32.xlu1 %v2578_v14, %s2277_s14  ;;  %728 = vrot.lane.b32.xlu0 %v2558_v62, %s2280_s15  ;;  %v1479_v42 = vmul.f32 1.442695, %v1475_v32  ;;  %v1477_v44 = vmul.f32 %v1473_v33, %v1417_v18  ;;  %s2289_s14 = smov 80  }
 0x277   : > { %2096 = vrcp.f32 %v1424_v23  ;;  %v1426_v27 = vadd.f32 1.0, %v1422_v26  ;;  %v1481_v46 = vmul.f32 1.442695, %v1476_v36  ;;  %v1478_v52 = vmul.f32 %v1474_v39, %v1418_v24 }
 0x278   : > { %2098 = vrcp.f32 %v1425_v25  ;;  %v1483_v57 = vmul.f32 1.442695, %v1477_v44 }
 0x279   : > { %2100 = vrcp.f32 %v1426_v27  ;;  %v1485_v0 = vmul.f32 1.442695, %v1478_v52 }
 0x27a   : > { %724 = vrot.lane.b32.xlu1 %v2578_v14, %s2279_s20  ;;  %754 = vrot.lane.b32.xlu0 %v2596_v28, %s2281_s27  ;;  %2102 = vpow2.f32 %v1479_v42 }
 0x27b   : > { %2104 = vpow2.f32 %v1481_v46 }
 0x27c   : > { %2106 = vpow2.f32 %v1483_v57  ;;  %v1409_v57 = vmul.f32 0.5, %v2565_v5 }
 0x27d   : > { %2108 = vpow2.f32 %v1485_v0 }
 0x27e   : > { %730 = vrot.lane.b32.xlu1 %v2578_v14, %s2280_s15 }
 0x280   : > { %v2095_v31 = vpop.eup %2094 }
 0x281   : > { %v2097_v34 = vpop.eup %2096  ;;  %v1435_v35 = vmul.f32 1.0614054, %v2095_v31 }
 0x282   : > { %v1436_v38 = vmul.f32 1.0614054, %v2097_v34  ;;  %756 = vrot.lane.b32.xlu1 %v2606_v37, %s2281_s27  ;;  %v2099_v41 = vpop.eup %2098 }
 0x283   : > { %v1439_v40 = vadd.f32 -1.4531521, %v1435_v35  ;;  %v1437_v47 = vmul.f32 1.0614054, %v2099_v41  ;;  %v2101_v50 = vpop.eup %2100 }
 0x284   : > { %v1440_v43 = vadd.f32 -1.4531521, %v1436_v38  ;;  %v1438_v55 = vmul.f32 1.0614054, %v2101_v50  ;;  %v2103_v25 = vpop.eup %2102 }
 0x285   : > { %v1443_v45 = vmul.f32 %v2095_v31, %v1439_v40  ;;  %v1441_v54 = vadd.f32 -1.4531521, %v1437_v47  ;;  %v2105_v27 = vpop.eup %2104 }
 0x286   : > { %v1444_v51 = vmul.f32 %v2097_v34, %v1440_v43  ;;  %v1442_v60 = vadd.f32 -1.4531521, %v1438_v55  ;;  %v2107_v39 = vpop.eup %2106 }
 0x287   : > { %v1447_v53 = vadd.f32 1.4214138, %v1443_v45  ;;  %v1445_v59 = vmul.f32 %v2099_v41, %v1441_v54  ;;  %v2109_v45 = vpop.eup %2108 }
 0x288   : > { %v1448_v56 = vadd.f32 1.4214138, %v1444_v51  ;;  %v1446_v6 = vmul.f32 %v2101_v50, %v1442_v60 }
 0x289   : > { %v1451_v58 = vmul.f32 %v2095_v31, %v1447_v53  ;;  %v1449_v3 = vadd.f32 1.4214138, %v1445_v59 }
 0x28a   : > { %v1452_v63 = vmul.f32 %v2097_v34, %v1448_v56  ;;  %v1450_v12 = vadd.f32 1.4214138, %v1446_v6 }
 0x28b   : > { %v1455_v2 = vadd.f32 -0.28449672, %v1451_v58  ;;  %v1453_v10 = vmul.f32 %v2099_v41, %v1449_v3  ;;  %v1408_v58 = vmul.f32 0.5, %v2560_v1  ;;  %v701_v1 = vld [vmem:[#allocation3] sm:$0xff] }
 0x28c   : > { %v1456_v7 = vadd.f32 -0.28449672, %v1452_v63  ;;  %v1454_v19 = vmul.f32 %v2101_v50, %v1450_v12  ;;  %v1410_v63 = vmul.f32 0.5, %v2572_v11  ;;  %v737_v11 = vmul.f32 %v2596_v28, %v2558_v62 }
 0x28d   : > { %v1459_v9 = vmul.f32 %v2095_v31, %v1455_v2  ;;  %v1457_v18 = vadd.f32 -0.28449672, %v1453_v10 }
 0x28e   : > { %v1460_v15 = vmul.f32 %v2097_v34, %v1456_v7  ;;  %v1458_v24 = vadd.f32 -0.28449672, %v1454_v19  ;;  %v703_v19 = vld [vmem:[#allocation6] sm:$0xff] }
 0x28f   : > { %v1463_v17 = vadd.f32 0.2548296, %v1459_v9  ;;  %v1461_v23 = vmul.f32 %v2099_v41, %v1457_v18  ;;  %v702_v18 = vld [vmem:[#allocation3 + $0x8] sm:$0xff] }
 0x290   : > { %v1464_v21 = vadd.f32 0.2548296, %v1460_v15  ;;  %v1462_v32 = vmul.f32 %v2101_v50, %v1458_v24 }
 0x291   : > { %v1467_v22 = vmul.f32 %v2095_v31, %v1463_v17  ;;  %v1465_v30 = vadd.f32 0.2548296, %v1461_v23 }
 0x292   : > { %v1468_v26 = vmul.f32 %v2097_v34, %v1464_v21  ;;  %v1466_v38 = vadd.f32 0.2548296, %v1462_v32  ;;  %v738_v21 = vmul.f32 %v2606_v37, %v2578_v14  ;;  %v704_v37 = vld [vmem:[#allocation6 + $0x8] sm:$0xff] }
 0x293   : > { %v1487_v29 = vmul.f32 %v2103_v25, %v1467_v22  ;;  %v1469_v36 = vmul.f32 %v2099_v41, %v1465_v30  ;;  %v1407_v41 = vmul.f32 0.5, %v2556_v61 }
 0x294   : > { %v1488_v33 = vmul.f32 %v2105_v27, %v1468_v26  ;;  %v1470_v44 = vmul.f32 %v2101_v50, %v1466_v38 }
 0x295   : > { %v1491_v35 = vsub.f32 1.0, %v1487_v29  ;;  %v1489_v43 = vmul.f32 %v2107_v39, %v1469_v36 }
 0x296   : > { %v1492_v40 = vsub.f32 1.0, %v1488_v33  ;;  %v1490_v34 = vmul.f32 %v2109_v45, %v1470_v44 }
 0x297   : > { %v1499_v42 = vsub.f32 0.0, %v1491_v35  ;;  %v1493_v47 = vsub.f32 1.0, %v1489_v43 }
 0x298   : > { %v1500_v31 = vsub.f32 0.0, %v1492_v40  ;;  %v1494_v53 = vsub.f32 1.0, %v1490_v34 }
 0x299   : > { %v1503_v46 = vsel %vm1495_vm1, %v1491_v35, %v1499_v42  ;;  %v1501_v52 = vsub.f32 0.0, %v1493_v47 }
 0x29a   : > { %v1504_v51 = vsel %vm1496_vm2, %v1492_v40, %v1500_v31  ;;  %v1507_v54 = vadd.f32 1.0, %v1503_v46  ;;  %v1502_v56 = vsub.f32 0.0, %v1494_v53 }
 0x29b   : > { %v1505_v55 = vsel %vm1497_vm3, %v1493_v47, %v1501_v52  ;;  %v1508_v50 = vadd.f32 1.0, %v1504_v51  ;;  %v2282_v47 = vmov 0.0  }
 0x29c   : > { %v1509_v4 = vadd.f32 1.0, %v1505_v55  ;;  %v1506_v59 = vsel %vm1498_vm4, %v1494_v53, %v1502_v56  ;;  %v2617_v8 = vmul.f32 %v1507_v54, %v1407_v41  ;;  %1909 = vmatprep.subr.bf16.mxu0 %v2282_v47  ;;  %1927 = vmatprep.subr.bf16.mxu1 %v2282_v47 }
 0x29d   : > { %v1510_v13 = vadd.f32 1.0, %v1506_v59  ;;  %v2622_v0 = vmul.f32 %v1508_v50, %v1408_v58  ;;  %1911 = vmatprep.mubr.msk.bf16.mxu0 %vm2283_vm7, %v2282_v47  ;;  %1929 = vmatprep.mubr.msk.bf16.mxu1 %vm2283_vm7, %v2282_v47 }
 0x29e   : > { %v2619_v60 = vmul.f32 %v1509_v4, %v1409_v57 }
 0x29f   : > { %v2626_v2 = vmul.f32 %v1510_v13, %v1410_v63 }
 0x2a0   : > { %v1515_v61 = vpack.c.bf16 %v2619_v60, %v2617_v8  ;;  %v2087_v8 = vld [vmem:[%s2901_s5 + $0x8] sm:$0xff]   ;;  %v2088_v60 = vld [vmem:[%s2901_s5 + $0x10] sm:$0xff]  }
 0x2a1   : > { %v1516_v5 = vpack.c.bf16 %v2626_v2, %v2622_v0  ;;  %v2076_v0 = vld [vmem:[%s2903_s7 + $0x58] sm:$0xff]  }
 0x2a2   : > { %v2077_v2 = vld [vmem:[%s2903_s7 + $0x18] sm:$0xff]  }
 0x2e0   : > { %v714_v20 = vpop.permute.xlu1 %713  ;;  %v708_v3 = vpop.permute.xlu0 %707 }
 0x2e1   : > { %v720_v6 = vsel %vm719_vm5, %v708_v3, %v714_v20  ;;  %v748_v7 = vsel %vm719_vm5, %v714_v20, %v708_v3 }
 0x2e2   : > { %v739_v9 = vmul.f32 %v720_v6, %v701_v1  ;;  %v762_v10 = vmul.f32 %v748_v7, %v701_v1 }
 0x2e4   : > { %v741_v12 = vadd.f32 %v739_v9, %v737_v11  ;;  %v710_v15 = vpop.permute.xlu1 %709  ;;  %766 = vrot.lane.b32.xlu0 %v762_v10, %s2281_s27  ;;  %v723_v17 = vpop.permute.xlu0 %722 }
 0x2e8   : > { %v716_v22 = vpop.permute.xlu1 %715  ;;  %v729_v23 = vpop.permute.xlu0 %728 }
 0x2e9   : > { %v721_v24 = vsel %vm719_vm5, %v710_v15, %v716_v22  ;;  %v749_v25 = vsel %vm719_vm5, %v716_v22, %v710_v15  ;;  %v735_v28 = vsel %vm734_vm6, %v723_v17, %v729_v23  ;;  %v750_v26 = vsel %vm734_vm6, %v729_v23, %v723_v17 }
 0x2ea   : > { %v740_v27 = vmul.f32 %v721_v24, %v702_v18  ;;  %v763_v29 = vmul.f32 %v749_v25, %v702_v18  ;;  %v743_v30 = vmul.f32 %v735_v28, %v703_v19  ;;  %v774_v32 = vmul.f32 %v750_v26, %v703_v19 }
 0x2ec   : > { %v742_v33 = vadd.f32 %v740_v27, %v738_v21  ;;  %v745_v35 = vadd.f32 %v743_v30, %v741_v12  ;;  %768 = vrot.lane.b32.xlu1 %v763_v29, %s2281_s27  ;;  %v725_v36 = vpop.permute.xlu1 %724  ;;  %778 = vrot.lane.b32.xlu0 %v774_v32, %s2281_s27  ;;  %v755_v31 = vpop.permute.xlu0 %754 }
 0x2ed   : > { %v760_v52 = vmul.f32 %v755_v31, %v2558_v62  ;;  %v2666_v62 = vand.u32 127, %v510_v48 }
 0x2ef   : > { %vm793_vm9 = vcmp.le.s32.totalorder %v2666_v62, %v2547_v49 }
 0x2f0   : > { %v731_v38 = vpop.permute.xlu1 %730 }
 0x2f1   : > { %v736_v39 = vsel %vm734_vm6, %v725_v36, %v731_v38  ;;  %v751_v40 = vsel %vm734_vm6, %v731_v38, %v725_v36 }
 0x2f2   : > { %v744_v42 = vmul.f32 %v736_v39, %v704_v37  ;;  %v775_v43 = vmul.f32 %v751_v40, %v704_v37 }
 0x2f4   : > { %v746_v44 = vadd.f32 %v744_v42, %v742_v33  ;;  %780 = vrot.lane.b32.xlu1 %v775_v43, %s2281_s27  ;;  %v757_v46 = vpop.permute.xlu1 %756 }
 0x2f5   : > { %v761_v53 = vmul.f32 %v757_v46, %v2578_v14  ;;  %v2669_v14 = vadd.s32 8, %v2547_v49 }
 0x2f6   : > { %v2646_v45 = vpack.c.bf16 %v746_v44, %v745_v35 }
 0x2f7   : > { %vm794_vm10 = vcmp.le.s32.totalorder %v2666_v62, %v2669_v14 }
 0x356   : > { %v767_v34 = vpop.permute.xlu0 %766 }
 0x357   : > { %v772_v41 = vadd.f32 %v767_v34, %v760_v52 }
 0x35e   : > { %v769_v51 = vpop.permute.xlu1 %768  ;;  %v779_v54 = vpop.permute.xlu0 %778 }
 0x35f   : > { %v773_v55 = vadd.f32 %v769_v51, %v761_v53  ;;  %v784_v50 = vadd.f32 %v779_v54, %v772_v41 }
 0x366   : > { %v781_v56 = vpop.permute.xlu1 %780 }
 0x367   : > { %v785_v57 = vadd.f32 %v781_v56, %v773_v55 }
 0x369   : > { %v786_v4 = vpack.c.bf16 %v785_v57, %v784_v50 }
 0x36b   : > { %796 = vrot.lane.b32.xlu0 %v786_v4, %s2281_s27 }
 0x3dd   : > { %v797_v58 = vpop.permute.xlu0 %796 }
 0x3de   : > { %v803_v59 = vsel %vm798_vm8, %v797_v58, 0 }
 0x3df   : > { %1910 = vmatpush3.bf16.xpose.msra.mxu0 %v803_v59 }
 0x3e0   : > { %1915 = vmatprep.subr.bf16.mxu0 %v2282_v47 }
 0x3e6   : > { %1912 = vmatmul.mubr.msk.bf16.vlgmr.msra.gmra.mrb[4].mxu0 %vm798_vm8, %v2646_v45 }
 0x3e7   : > { %1916 = vmatpush3.bf16.msra.mxu0 %v2581_v16  ;;  %1917 = vmatprep.mubr.msk.bf16.mxu0 %vm2283_vm7, %v2282_v47 }
 0x3e8   : > { %1921 = vmatprep.subr.bf16.mxu0 %v2282_v47 }
 0x4b9   : > { %v839_v63 = vpop.f32.mrb[4].mxu0 }
 0x4ba   : > { %v846_v13 = vsel %vm793_vm9, %v839_v63, -1e+30  ;;  %v1913_v1 = vpop.f32.mrb[5].mxu0 }
 0x4bb   : > { %v842_v20 = vpop.f32.mrb[6].mxu0  ;;  %v848_v3 = vsel %vm798_vm8, %v846_v13, -inf }
 0x4bc   : > { %v847_v48 = vsel %vm794_vm10, %v842_v20, -1e+30  ;;  %849 = vmax.xlane.f32.xlu1 %v848_v3  ;;  %v1914_v6 = vpop.f32.mrb[7].mxu0 }
 0x4bd   : > { %v851_v7 = vsel %vm798_vm8, %v847_v48, -inf }
 0x4be   : > { %852 = vmax.xlane.f32.xlu0 %v851_v7 }
 0x4cd   : > { %920 = vrot.lane.b32.xlu1 %v786_v4, %s2284_s16 }
 0x4d1   : > { %1055 = vrot.lane.b32.xlu1 %v786_v4, %s2285_s19 }
 0x4d5   : > { %1053 = vrot.lane.b32.xlu1 %v2646_v45, %s2286_s17 }
 0x4d9   : > { %1189 = vrot.lane.b32.xlu1 %v786_v4, %s2287_s21 }
 0x549   : > { %v850_v11 = vpop.xlane.xlu1 %849 }
 0x54a   : > { %v854_v9 = vsub.f32 %v846_v13, %v850_v11 }
 0x54b   : > { %v853_v10 = vpop.xlane.xlu0 %852 }
 0x54c   : > { %v856_v12 = vmul.f32 1.442695, %v854_v9  ;;  %v855_v15 = vsub.f32 %v847_v48, %v853_v10 }
 0x54d   : > { %v921_v26 = vpop.permute.xlu1 %920 }
 0x54e   : > { %2110 = vpow2.f32 %v856_v12  ;;  %v858_v17 = vmul.f32 1.442695, %v855_v15  ;;  %v926_v32 = vsel %vm798_vm8, %v921_v26, 0 }
 0x550   : > { %2112 = vpow2.f32 %v858_v17 }
 0x551   : > { %v1056_v33 = vpop.permute.xlu1 %1055 }
 0x552   : > { %v1061_v37 = vsel %vm798_vm8, %v1056_v33, 0 }
 0x555   : > { %v1054_v35 = vpop.permute.xlu1 %1053 }
 0x558   : > { %v2111_v18 = vpop.eup %2110 }
 0x559   : > { %v860_v19 = vsel %vm798_vm8, %v2111_v18, 0.0  ;;  %v1190_v38 = vpop.permute.xlu1 %1189 }
 0x55a   : > { %v2113_v21 = vpop.eup %2112  ;;  %861 = vadd.xlane.f32.xlu0 %v860_v19  ;;  %v1195_v39 = vsel %vm798_vm8, %v1190_v38, 0 }
 0x55b   : > { %v863_v22 = vsel %vm798_vm8, %v2113_v21, 0.0 }
 0x55e   : > { %864 = vadd.xlane.f32.xlu0 %v863_v22 }
 0x574   : > { %918 = vrot.lane.b32.xlu0 %v2646_v45, %s2288_s24 }
 0x578   : > { %1187 = vrot.lane.b32.xlu0 %v2646_v45, %s2289_s14 }
 0x5e7   : > { %v862_v23 = vpop.xlane.xlu0 %861 }
 0x5e8   : > { %2114 = vrcp.f32 %v862_v23 }
 0x5eb   : > { %v865_v24 = vpop.xlane.xlu0 %864 }
 0x5ec   : > { %2116 = vrcp.f32 %v865_v24 }
 0x5ef   : > { %v919_v36 = vpop.permute.xlu0 %918 }
 0x5f2   : > { %v2115_v25 = vpop.eup %2114 }
 0x5f3   : > { %v868_v27 = vmul.f32 %v2115_v25, %v2111_v18  ;;  %v1188_v40 = vpop.permute.xlu0 %1187 }
 0x5f6   : > { %v2117_v28 = vpop.eup %2116 }
 0x5f7   : > { %v869_v29 = vmul.f32 %v2117_v28, %v2113_v21 }
 0x5f9   : > { %v870_v30 = vpack.c.bf16 %v869_v29, %v868_v27 }
 0x5fb   : > { %1918 = vmatmul.mubr.msk.bf16.vlgmr.msra.gmra.mrb[8].mxu0 %vm798_vm8, %v870_v30 }
 0x5fc   : > { %1922 = vmatpush3.bf16.xpose.msra.mxu0 %v926_v32  ;;  %1923 = vmatprep.mubr.msk.bf16.mxu0 %vm2283_vm7, %v2282_v47 }
 0x5fd   : > { %1933 = vmatprep.subr.bf16.mxu0 %v2282_v47 }
 0x603   : > { %1924 = vmatmul.mubr.msk.bf16.vlgmr.msra.gmra.mrb[12].mxu0 %vm798_vm8, %v919_v36 }
 0x604   : > { %1934 = vmatpush3.bf16.xpose.msra.mxu0 %v1061_v37  ;;  %1935 = vmatprep.mubr.msk.bf16.mxu0 %vm2283_vm7, %v2282_v47 }
 0x605   : > { %1945 = vmatprep.subr.bf16.mxu0 %v2282_v47 }
 0x60b   : > { %1936 = vmatmul.mubr.msk.bf16.vlgmr.msra.gmra.mrb[16].mxu0 %vm798_vm8, %v1054_v35 }
 0x60c   : > { %1946 = vmatpush3.bf16.xpose.msra.mxu0 %v1195_v39  ;;  %1947 = vmatprep.mubr.msk.bf16.mxu0 %vm2283_vm7, %v2282_v47 }
 0x60d   : > { %1957 = vmatprep.subr.bf16.mxu0 %v2282_v47 }
 0x613   : > { %1948 = vmatmul.mubr.msk.bf16.vlgmr.msra.gmra.mrb[20].mxu0 %vm798_vm8, %v1188_v40 }
 0x614   : > { %1965 = vmatprep.mubr.msk.bf16.mxu0 %vm2283_vm7, %v2282_v47 }
 0x6ce   : > { %v908_v42 = vpop.f32.mrb[8].mxu0 }
 0x6cf   : > { %915 = vst.msk [vmem:[#allocation2] sm:$0xff] %vm798_vm8, %v908_v42  ;;  %v1919_v43 = vpop.f32.mrb[9].mxu0 }
 0x6d0   : > { %v911_v44 = vpop.f32.mrb[10].mxu0 }
 0x6d1   : > { %916 = vst.msk [vmem:[#allocation2 + $0x8] sm:$0xff] %vm798_vm8, %v911_v44  ;;  %v1920_v45 = vpop.f32.mrb[11].mxu0 }
 0x6d6   : > { %v962_v31 = vpop.f32.mrb[12].mxu0 }
 0x6d7   : > { %v969_v46 = vsel %vm793_vm9, %v962_v31, -1e+30  ;;  %v1925_v34 = vpop.f32.mrb[13].mxu0 }
 0x6d8   : > { %v965_v51 = vpop.f32.mrb[14].mxu0  ;;  %v971_v52 = vsel %vm798_vm8, %v969_v46, -inf }
 0x6d9   : > { %v970_v53 = vsel %vm794_vm10, %v965_v51, -1e+30  ;;  %972 = vmax.xlane.f32.xlu1 %v971_v52  ;;  %v1926_v54 = vpop.f32.mrb[15].mxu0 }
 0x6da   : > { %v974_v41 = vsel %vm798_vm8, %v970_v53, -inf }
 0x6db   : > { %975 = vmax.xlane.f32.xlu0 %v974_v41 }
 0x6de   : > { %v1097_v55 = vpop.f32.mrb[16].mxu0 }
 0x6df   : > { %v1104_v56 = vsel %vm793_vm9, %v1097_v55, -1e+30  ;;  %v1937_v50 = vpop.f32.mrb[17].mxu0 }
 0x6e0   : > { %v1100_v57 = vpop.f32.mrb[18].mxu0  ;;  %v1106_v4 = vsel %vm798_vm8, %v1104_v56, -inf }
 0x6e1   : > { %v1105_v58 = vsel %vm794_vm10, %v1100_v57, -1e+30  ;;  %1107 = vmax.xlane.f32.xlu0 %v1106_v4  ;;  %v1938_v59 = vpop.f32.mrb[19].mxu0 }
 0x6e2   : > { %v1109_v63 = vsel %vm798_vm8, %v1105_v58, -inf }
 0x6e5   : > { %1110 = vmax.xlane.f32.xlu0 %v1109_v63  ;;  %v2070_v63 = vld [vmem:[%s2903_s7 + $0x40] sm:$0xff]  }
 0x6e6   : > { %v1231_v13 = vpop.f32.mrb[20].mxu0 }
 0x6e7   : > { %v1238_v1 = vsel %vm793_vm9, %v1231_v13, -1e+30  ;;  %v1949_v20 = vpop.f32.mrb[21].mxu0 }
 0x6e8   : > { %v1234_v3 = vpop.f32.mrb[22].mxu0  ;;  %v1240_v48 = vsel %vm798_vm8, %v1238_v1, -inf }
 0x6e9   : > { %v1239_v6 = vsel %vm794_vm10, %v1234_v3, -1e+30  ;;  %1241 = vmax.xlane.f32.xlu1 %v1240_v48  ;;  %v1950_v7 = vpop.f32.mrb[23].mxu0 }
 0x6ea   : > { %v1243_v11 = vsel %vm798_vm8, %v1239_v6, -inf }
 0x6eb   : > { %1244 = vmax.xlane.f32.xlu0 %v1243_v11  ;;  %v2072_v11 = vld [vmem:[%s2903_s7 + $0x48] sm:$0xff]  }
 0x6fa   : > { %995 = vrot.lane.b32.xlu1 %v2581_v16, %s2288_s24  ;;  %s2847_s24 = scalar_lea.hbm %s2908_s12, %s1865_s23 }
 0x766   : > { %v973_v9 = vpop.xlane.xlu1 %972 }
 0x767   : > { %v977_v10 = vsub.f32 %v969_v46, %v973_v9  ;;  %v2073_v9 = vld [vmem:[%s2903_s7 + $0x8] sm:$0xff]  }
 0x768   : > { %v976_v49 = vpop.xlane.xlu0 %975 }
 0x769   : > { %v979_v12 = vmul.f32 1.442695, %v977_v10  ;;  %v978_v15 = vsub.f32 %v970_v53, %v976_v49  ;;  %v2074_v10 = vld [vmem:[%s2903_s7 + $0x50] sm:$0xff]  }
 0x76a   : > { %v2075_v49 = vld [vmem:[%s2903_s7 + $0x10] sm:$0xff]  }
 0x76b   : > { %2118 = vpow2.f32 %v979_v12  ;;  %v981_v17 = vmul.f32 1.442695, %v978_v15  ;;  %v2079_v12 = vld [vmem:[%s2903_s7 + $0x20] sm:$0xff]   ;;  %v2080_v15 = vld [vmem:[%s2903_s7 + $0x68] sm:$0xff]  }
 0x76d   : > { %2120 = vpow2.f32 %v981_v17  ;;  %v2081_v17 = vld [vmem:[%s2903_s7 + $0x28] sm:$0xff]  }
 0x76e   : > { %v1108_v18 = vpop.xlane.xlu0 %1107 }
 0x76f   : > { %v1112_v19 = vsub.f32 %v1104_v56, %v1108_v18  ;;  %v2082_v18 = vld [vmem:[%s2903_s7 + $0x70] sm:$0xff]  }
 0x771   : > { %v1114_v62 = vmul.f32 1.442695, %v1112_v19  ;;  %v2083_v19 = vld [vmem:[%s2903_s7 + $0x30] sm:$0xff]  }
 0x772   : > { %v1111_v14 = vpop.xlane.xlu0 %1110 }
 0x773   : > { %2122 = vpow2.f32 %v1114_v62  ;;  %v1113_v21 = vsub.f32 %v1105_v58, %v1111_v14  ;;  %v2084_v62 = vld [vmem:[%s2903_s7 + $0x78] sm:$0xff]  }
 0x774   : > { %v2085_v14 = vld [vmem:[%s2903_s7 + $0x38] sm:$0xff]  }
 0x775   : > { %v2119_v22 = vpop.eup %2118  ;;  %v1116_v23 = vmul.f32 1.442695, %v1113_v21 }
 0x776   : > { %v1242_v24 = vpop.xlane.xlu1 %1241  ;;  %v983_v25 = vsel %vm798_vm8, %v2119_v22, 0.0 }
 0x777   : > { %v2121_v28 = vpop.eup %2120  ;;  %2124 = vpow2.f32 %v1116_v23  ;;  %v1246_v26 = vsub.f32 %v1238_v1, %v1242_v24  ;;  %984 = vadd.xlane.f32.xlu1 %v983_v25 }
 0x778   : > { %v1245_v27 = vpop.xlane.xlu0 %1244  ;;  %v986_v29 = vsel %vm798_vm8, %v2121_v28, 0.0 }
 0x779   : > { %v1248_v30 = vmul.f32 1.442695, %v1246_v26  ;;  %v1247_v32 = vsub.f32 %v1239_v6, %v1245_v27  ;;  %987 = vadd.xlane.f32.xlu0 %v986_v29  ;;  %v2071_v6 = vld [vmem:[%s2903_s7] sm:$0xff]   ;;  %v2089_v27 = vld [vmem:[%s2901_s5 + $0x18] sm:$0xff]  }
 0x77a   : > { %v996_v33 = vpop.permute.xlu1 %995 }
 0x77b   : > { %2126 = vpow2.f32 %v1248_v30  ;;  %v1250_v35 = vmul.f32 1.442695, %v1247_v32  ;;  %1928 = vmatpush3.bf16.msra.mxu1 %v996_v33 }
 0x77c   : > { %1939 = vmatprep.subr.bf16.mxu1 %v2282_v47 }
 0x77d   : > { %v2123_v36 = vpop.eup %2122  ;;  %2128 = vpow2.f32 %v1250_v35 }
 0x77e   : > { %v1118_v37 = vsel %vm798_vm8, %v2123_v36, 0.0 }
 0x77f   : > { %1119 = vadd.xlane.f32.xlu1 %v1118_v37 }
 0x781   : > { %v2125_v38 = vpop.eup %2124 }
 0x782   : > { %v1121_v39 = vsel %vm798_vm8, %v2125_v38, 0.0 }
 0x783   : > { %1122 = vadd.xlane.f32.xlu0 %v1121_v39 }
 0x785   : > { %v2127_v40 = vpop.eup %2126 }
 0x786   : > { %v1252_v42 = vsel %vm798_vm8, %v2127_v40, 0.0 }
 0x787   : > { %v2129_v43 = vpop.eup %2128  ;;  %1253 = vadd.xlane.f32.xlu1 %v1252_v42 }
 0x788   : > { %v1255_v44 = vsel %vm798_vm8, %v2129_v43, 0.0 }
 0x789   : > { %1256 = vadd.xlane.f32.xlu0 %v1255_v44 }
 0x798   : > { %1263 = vrot.lane.b32.xlu1 %v2581_v16, %s2289_s14 }
 0x79f   : > { %1129 = vrot.lane.b32.xlu0 %v2581_v16, %s2286_s17 }
 0x804   : > { %v985_v45 = vpop.xlane.xlu1 %984 }
 0x805   : > { %2130 = vrcp.f32 %v985_v45 }
 0x806   : > { %v988_v31 = vpop.xlane.xlu0 %987 }
 0x807   : > { %2132 = vrcp.f32 %v988_v31 }
 0x80c   : > { %v1120_v46 = vpop.xlane.xlu1 %1119 }
 0x80d   : > { %2134 = vrcp.f32 %v1120_v46 }
 0x80f   : > { %v2131_v34 = vpop.eup %2130 }
 0x810   : > { %v1123_v51 = vpop.xlane.xlu0 %1122  ;;  %v991_v53 = vmul.f32 %v2131_v34, %v2119_v22  ;;  %v2086_v22 = vld [vmem:[%s2901_s5] sm:$0xff]  }
 0x811   : > { %v2133_v52 = vpop.eup %2132  ;;  %2136 = vrcp.f32 %v1123_v51  ;;  %1958 = vmatpush3.bf16.msra.mxu0 %v2086_v22 }
 0x812   : > { %v992_v54 = vmul.f32 %v2133_v52, %v2121_v28  ;;  %1959 = vmatprep.subr.bf16.mxu0 %v2282_v47 }
 0x814   : > { %v1254_v41 = vpop.xlane.xlu1 %1253  ;;  %v993_v55 = vpack.c.bf16 %v992_v54, %v991_v53  ;;  %v1842_v53 = vld [vmem:[%s2904_s8] ss:$0 sm:$0xff] }
 0x815   : > { %2138 = vrcp.f32 %v1254_v41  ;;  %1960 = vmatpush3.bf16.msra.mxu0 %v2087_v8  ;;  %v1836_v54 = vld [vmem:[%s2902_s6] ss:$0 sm:$0xff] }
 0x816   : > { %1930 = vmatmul.mubr.msk.bf16.vlgmr.msra.gmra.mrb[4].mxu1 %vm798_vm8, %v993_v55  ;;  %v1257_v56 = vpop.xlane.xlu0 %1256  ;;  %1961 = vmatprep.subr.bf16.mxu0 %v2282_v47 }
 0x817   : > { %2140 = vrcp.f32 %v1257_v56  ;;  %1941 = vmatprep.mubr.msk.bf16.mxu1 %vm2283_vm7, %v2282_v47  ;;  %v2135_v16 = vpop.eup %2134 }
 0x818   : > { %v1126_v4 = vmul.f32 %v2135_v16, %v2123_v36  ;;  %v1264_v1 = vpop.permute.xlu1 %1263 }
 0x819   : > { %1962 = vmatpush3.bf16.msra.mxu0 %v2088_v60 }
 0x81a   : > { %v1130_v50 = vpop.permute.xlu0 %1129  ;;  %1963 = vmatprep.subr.bf16.mxu0 %v2282_v47 }
 0x81b   : > { %v2137_v57 = vpop.eup %2136  ;;  %1940 = vmatpush3.bf16.msra.mxu1 %v1130_v50 }
 0x81c   : > { %v1127_v58 = vmul.f32 %v2137_v57, %v2125_v38  ;;  %1951 = vmatprep.subr.bf16.mxu1 %v2282_v47 }
 0x81d   : > { %1964 = vmatpush3.bf16.msra.mxu0 %v2089_v27 }
 0x81e   : > { %v1128_v59 = vpack.c.bf16 %v1127_v58, %v1126_v4 }
 0x81f   : > { %v2139_v13 = vpop.eup %2138 }
 0x820   : > { %1942 = vmatmul.mubr.msk.bf16.vlgmr.msra.gmra.mrb[8].mxu1 %vm798_vm8, %v1128_v59  ;;  %v1260_v48 = vmul.f32 %v2139_v13, %v2127_v40 }
 0x821   : > { %v2141_v20 = vpop.eup %2140  ;;  %1952 = vmatpush3.bf16.msra.mxu1 %v1264_v1  ;;  %1953 = vmatprep.mubr.msk.bf16.mxu1 %vm2283_vm7, %v2282_v47 }
 0x822   : > { %v1261_v3 = vmul.f32 %v2141_v20, %v2129_v43  ;;  %1887 = vmatprep.subr.bf16.mxu1 %v2070_v63  ;;  %v2142_v63 = vld [vmem:[%s2482_s30] sm:$0xff]  ;;  %v2143_v20 = vld [vmem:[%s2482_s30 + $0x8] sm:$0xff] }
 0x824   : > { %v1262_v7 = vpack.c.bf16 %v1261_v3, %v1260_v48 }
 0x828   : > { %1954 = vmatmul.mubr.msk.bf16.vlgmr.msra.gmra.mrb[12].mxu1 %vm798_vm8, %v1262_v7 }
 0x829   : > { %1888 = vmatpush3.bf16.msra.mxu1 %v2071_v6  ;;  %1684 = vmatprep.mubr.bf16.mxu1 %v1516_v5  ;;  %v2078_v5 = vld [vmem:[%s2903_s7 + $0x60] sm:$0xff]  }
 0x82a   : > { %1889 = vmatprep.subr.bf16.mxu1 %v2072_v11 }
 0x82d   : > { %1890 = vmatpush3.bf16.msra.mxu1 %v2073_v9 }
 0x82e   : > { %1891 = vmatprep.subr.bf16.mxu1 %v2074_v10 }
 0x831   : > { %1892 = vmatpush3.bf16.msra.mxu1 %v2075_v49 }
 0x832   : > { %1893 = vmatprep.subr.bf16.mxu1 %v2076_v0 }
 0x835   : > { %1894 = vmatpush3.bf16.msra.mxu1 %v2077_v2 }
 0x836   : > { %1895 = vmatprep.subr.bf16.mxu1 %v2078_v5 }
 0x839   : > { %1896 = vmatpush3.bf16.msra.mxu1 %v2079_v12 }
 0x83a   : > { %1897 = vmatprep.subr.bf16.mxu1 %v2080_v15 }
 0x83d   : > { %1898 = vmatpush3.bf16.msra.mxu1 %v2081_v17 }
 0x83e   : > { %1899 = vmatprep.subr.bf16.mxu1 %v2082_v18 }
 0x841   : > { %1900 = vmatpush3.bf16.msra.mxu1 %v2083_v19 }
 0x842   : > { %1901 = vmatprep.subr.bf16.mxu1 %v2084_v62 }
 0x845   : > { %1902 = vmatpush3.bf16.msra.mxu1 %v2085_v14 }
 0x848   : > { %1685 = vmatmul.mubr.bf16.vlgmr.msra.gmra.mrb[16].mxu1 %v1515_v61 }
 0x8e9   : > { %v1035_v21 = vpop.f32.mrb[4].mxu1 }
 0x8ea   : > { %1044 = vrot.lane.b32.xlu1 %v1035_v21, %s2287_s21  ;;  %v1931_v23 = vpop.f32.mrb[5].mxu1 }
 0x8eb   : > { %v1038_v24 = vpop.f32.mrb[6].mxu1 }
 0x8ec   : > { %v1932_v25 = vpop.f32.mrb[7].mxu1 }
 0x8ee   : > { %1046 = vrot.lane.b32.xlu1 %v1038_v24, %s2287_s21 }
 0x8f3   : > { %v1169_v61 = vpop.f32.mrb[8].mxu1 }
 0x8f4   : > { %1178 = vrot.lane.b32.xlu0 %v1169_v61, %s2285_s19  ;;  %v1943_v28 = vpop.f32.mrb[9].mxu1 }
 0x8f5   : > { %v1172_v26 = vpop.f32.mrb[10].mxu1 }
 0x8f6   : > { %1180 = vrot.lane.b32.xlu1 %v1172_v26, %s2285_s19  ;;  %v1944_v29 = vpop.f32.mrb[11].mxu1  ;;  %s2290_s19 = smov [#allocation8]  }
 0x8f7   : > { %s2204_s21 = sshll.u32 %s2290_s19, 4  ;;  %s2205_s21 = int_to_ptr.vmem [resolvable:$false] %s2204_s21 }
 0x8fb   : > { %v1303_v30 = vpop.f32.mrb[12].mxu1 }
 0x8fc   : > { %1312 = vrot.lane.b32.xlu0 %v1303_v30, %s2284_s16  ;;  %v1955_v32 = vpop.f32.mrb[13].mxu1 }
 0x8fd   : > { %v1306_v33 = vpop.f32.mrb[14].mxu1 }
 0x8fe   : > { %1314 = vrot.lane.b32.xlu1 %v1306_v33, %s2284_s16  ;;  %v1956_v35 = vpop.f32.mrb[15].mxu1  ;;  %s434_s16 = sand.u32 1, %s2262_s22  }
 0x8ff   : > { %s1805_s18 = sshll.u32 %s434_s16, 4  ;;  %s2854_s25 = scalar_lea.sflag [#allocation5], %s434_s16 }
 0x900   : > { %s436_s27 = scalar_lea.vmem [#allocation8], %s1805_s18  ;;  %s2206_s18 = scalar_lea.vmem %s2205_s21, 512 }
 0x901   : > { %s1713_s28 = sshll.u32 %s436_s27, 4  ;;  %s2851_s28 = int_to_ptr.vmem [resolvable:$true] %s1713_s28 }
 0x902   : > { %s2200_s14 = scalar_lea.vmem %s2851_s28, 256  ;;  %p2207_p4 = scmp.lt.s32.totalorder %s2851_s28, %s2205_s21 }
 0x903   : > { %p2201_p12 = scmp.ne.s32.totalorder %s2851_s28, %s2200_s14  ;;  %p2208_p7 = scmp.lt.s32.totalorder %s2206_s18, %s2200_s14 }
 0x905   : > { %p2202_p2 = pnand %p2201_p12, %p2933_p1  ;;  %p2209_p8 = por %p2208_p7, %p2207_p4 }
 0x907   : > { %p2203_p3 = pneg %p2202_p2 }
 0x909   : > { %p2210_p11 = pnand %p2209_p8, %p2203_p3 }
 0x91b   : > { %v1903_v36 = vpop.f32.mrb[16].mxu1 }
 0x91c   : > { %v1904_v37 = vpop.f32.mrb[17].mxu1 }
 0x91d   : > { %v1905_v38 = vadd.f32 %v1904_v37, %v1903_v36  ;;  %v1906_v39 = vpop.f32.mrb[18].mxu1 }
 0x91e   : > { %v1907_v40 = vpop.f32.mrb[19].mxu1 }
 0x91f   : > { %v1908_v42 = vadd.f32 %v1907_v40, %v1906_v39  ;;  %v1687_v55 = vadd.f32 %v1905_v38, %v1842_v53 }
 0x921   : > { %v1690_v57 = vadd.f32 %v1908_v42, %v1842_v53 }
 0x95c   : > { %v1045_v43 = vpop.permute.xlu1 %1044 }
 0x95d   : > { %1051 = vst.msk [vmem:[#allocation2] sm:$0xff] %vm1050_vm11, %v1045_v43 }
 0x960   : > { %v1047_v44 = vpop.permute.xlu1 %1046 }
 0x961   : > { %1052 = vst.msk [vmem:[#allocation2 + $0x8] sm:$0xff] %vm1050_vm11, %v1047_v44 }
 0x966   : > { %v1179_v47 = vpop.permute.xlu0 %1178 }
 0x967   : > { %1185 = vst.msk [vmem:[#allocation2] sm:$0xff] %vm1184_vm12, %v1179_v47 }
 0x968   : > { %v1181_v45 = vpop.permute.xlu1 %1180 }
 0x969   : > { %1186 = vst.msk [vmem:[#allocation2 + $0x8] sm:$0xff] %vm1184_vm12, %v1181_v45 }
 0x96e   : > { %v1313_v31 = vpop.permute.xlu0 %1312 }
 0x96f   : > { %1319 = vst.msk [vmem:[#allocation2] sm:$0xff] %vm1318_vm13, %v1313_v31 }
 0x970   : > { %v1315_v46 = vpop.permute.xlu1 %1314 }
 0x971   : > { %1320 = vst.msk [vmem:[#allocation2 + $0x8] sm:$0xff] %vm1318_vm13, %v1315_v46 }
 0x976   : > { %v1321_v34 = vld [vmem:[#allocation2] sm:$0xff] }
 0x978   : > { %v1322_v51 = vld [vmem:[#allocation2 + $0x8] sm:$0xff] }
 0x979   : > { %v1323_v52 = vpack.c.bf16 %v1322_v51, %v1321_v34 }
 0x97b   : > { %1966 = vmatmul.mubr.msk.bf16.vlgmr.msra.gmra.mrb[24].mxu0 %vm445_vm0, %v1323_v52 }
 0xa4e   : > { %v1400_v41 = vpop.f32.mrb[24].mxu0 }
 0xa4f   : > { %v1401_v56 = vadd.f32 %v1836_v54, %v1400_v41  ;;  %v1967_v16 = vpop.f32.mrb[25].mxu0 }
 0xa50   : > { %v1403_v50 = vpop.f32.mrb[26].mxu0 }
 0xa51   : > { %v1693_v4 = vadd.f32 %v1687_v55, %v1401_v56  ;;  %v1404_v58 = vadd.f32 %v1836_v54, %v1403_v50  ;;  %v1968_v59 = vpop.f32.mrb[27].mxu0 }
 0xa53   : > { %v1695_v13 = vadd.f32 %v2142_v63, %v1693_v4  ;;  %v1694_v1 = vadd.f32 %v1690_v57, %v1404_v58 }
 0xa55   : > { %1697 = vst.msk [vmem:[%s436_s27] sm:$0xff] %vm445_vm0, %v1695_v13  ;;  %v1696_v3 = vadd.f32 %v2143_v20, %v1694_v1 }
 0xa57   : > { %1698 = vst.msk [vmem:[%s436_s27 + $0x8] sm:$0xff] %vm445_vm0, %v1696_v3 }
 0xa58   : > { %2213 = shalt.err (!%p2210_p11)
}
 0xa59   : > { %s2214_s30 = scalar_lea.hbm %s2847_s24, 256  ;;  %s2218_s26 = scalar_lea.hbm %s2908_s12, 512 }
 0xa5a   : > { %p2215_p13 = scmp.ne.s32.totalorder %s2847_s24, %s2214_s30  ;;  %p2219_p6 = scmp.lt.u32.totalorder %s2847_s24, %s2908_s12 }
 0xa5b   : > { %p2220_p9 = scmp.lt.u32.totalorder %s2218_s26, %s2214_s30  ;;  %p2222_p12 = scmp.lt.u32.totalorder %s2214_s30, %s2847_s24 }
 0xa5c   : > { %p2216_p5 = pnand %p2215_p13, %p2933_p1 }
 0xa5d   : > { %p2221_p10 = por %p2220_p9, %p2219_p6 }
 0xa5e   : > { %p2217_p0 = pneg %p2216_p5 }
 0xa5f   : > { %p2223_p2 = por %p2222_p12, %p2221_p10 }
 0xa61   : > { %p2224_p3 = pnand %p2223_p2, %p2217_p0 }
 0xa63   : > { %2227 = shalt.err (!%p2224_p3)
}
 0xa64   : > { %s2291_s29 = smov 128  }
 0xa65   : > { %1977 = dma.vmem_to_hbm [thread:$0]  (%p2933_p1), %s2851_s28, 256, %s2847_s24, %s2854_s25, %s2291_s29, %s2291_s29, %s2280_s15  }
 0xa66 PF: > { %s2934_s17 = sld [smem:[#allocation14_spill]]  ;;  %s2935_s14 = sld [smem:[#allocation12_spill]] }
 0xa67   : > { %s2936_s19 = sld [smem:[#allocation17_spill]] }
 0xa6c   : > { %p1994_p4 = scmp.ge.s32.totalorder %s2934_s17, 2  ;;  %s1728_s21 = sand.u32 1, %s2935_s14  }
 0xa6d   : > { %p2937_p7 = scmp.ne.s32.totalorder %s2936_s19, 0  ;;  %s1729_s18 = scalar_lea.sflag [#allocation5], %s1728_s21 }
 0xa6f   : > { %p1987_p8 = pnand %p1994_p4, %p2937_p7 }
 0xa71   : > { %2253 = dma.done.wait (!%p1987_p8), %s1729_s18, 256  }
 0xa72   : > { %2255 = vsyncadd (!%p1987_p8), %s1729_s18, 4294967040  ;;  %s2938_s24 = sld [smem:[#allocation15_spill]]  ;;  %s2939_s30 = sld [smem:[#allocation13_spill]] }
 0xa73   : > { %s2940_s23 = sld [smem:[#allocation16_spill]]  ;;  %s2941_s21 = smov %s2262_s22 }
 0xa78   : > { %p24_p11 = scmp.ge.s32.totalorder %s2938_s24, 4   ;;  %s2942_s22 = smov %s2939_s30 }
 0xa7a   :  { %26 = sbr.rel (!%p24_p11) target bundleno = 5 (0x5), region = 112 }
 0xa81   :  { %1734 = vsyncpa [#allocation4], 1 }
 0xa82   :  { %1736 = vsyncpa [#allocation4 + $0x1], 1 }
 0xa83   :  { %1737 = vsyncpa [#allocation7], 1 }
 0xa84   :  { %1738 = vsyncpa [#allocation5], 1 }
 0xa85   :  { %1740 = vsyncpa [#allocation5 + $0x1], 1 }

</bundles_post_ra>
